<compile_context>
chip_gen: v5e
topology: v5e:2x2
jax: 0.10.0
libtpu: 0.0.40
codegen_flags: <defaults>
</compile_context>

<pallas_src>
import math

import jax
import jax.numpy as jnp
from jax.experimental import pallas as pl
from jax.experimental.pallas import tpu as pltpu


def _round_up(x, n):
    return ((x + n - 1) // n) * n


def _cdiv(a, b):
    return -(-a // b)


# ----------------------------------------------------------------------------
# Kernel
# ----------------------------------------------------------------------------
def _make_mlp2_kernel(num_pre, num_reused, hidden_dim, output_dim1, output_dim2,
                      fuse_last, compute_dtype):
    """Fused kernel: fcs1 stack -> split oup1 -> fcs1 re-use -> output head."""

    def kernel(*refs):
        # refs layout:
        #   x,
        #   (w, b) * num_pre,                        # fcs1[:-1]
        #   last fcs1 layer:
        #     fused:  w_last, b_last
        #     split:  w_last_h, b_last_h, w_last_o1, b_last_o1
        #   w_out, b_out,
        #   out (merged, lane-padded:  oup1 | oup2 | pad)
        x_ref = refs[0]
        idx = 1
        pre = []
        for _ in range(num_pre):
            pre.append((refs[idx], refs[idx + 1]))
            idx += 2
        if fuse_last:
            w_last_ref, b_last_ref = refs[idx], refs[idx + 1]
            idx += 2
        else:
            w_h_ref, b_h_ref, w_o1_ref, b_o1_ref = refs[idx:idx + 4]
            idx += 4
        w_out_ref, b_out_ref = refs[idx], refs[idx + 1]
        idx += 2
        out_ref = refs[idx]

        def dense(h, w_ref, b_ref, relu=True, out_dtype=compute_dtype):
            # MXU matmul with inputs already in compute_dtype, f32 accumulation.
            y = jnp.dot(h, w_ref[...], preferred_element_type=jnp.float32)
            y = y + b_ref[...]                      # bias + ReLU in f32 (v5e-safe)
            if relu:
                y = jnp.maximum(y, 0.0)
            return y.astype(out_dtype)

        # Activations stay in compute_dtype between layers.
        h = x_ref[...].astype(compute_dtype)

        # First stack: h = relu(fcs1[i](h)) for fcs1[:-1].
        for w_ref, b_ref in pre:
            h = dense(h, w_ref, b_ref)

        # Last fcs1 layer.
        if fuse_last:
            # Single (hidden -> hidden+output_dim1) matmul + cheap lane slice.
            y = dense(h, w_last_ref, b_last_ref)
            oup1 = y[:, hidden_dim:]
            h = y[:, :hidden_dim]
        else:
            # Wide case: weight split wrapper-side -> two matmuls on resident
            # weights instead of an unaligned lane slice.
            oup1 = dense(h, w_o1_ref, b_o1_ref)     # last output_dim1 features
            h = dense(h, w_h_ref, b_h_ref)          # first hidden_dim features

        # Store oup1 immediately: shortest live range, store overlaps the
        # remaining matmuls.  No jnp.concatenate.
        out_ref[:, :output_dim1] = oup1.astype(out_ref.dtype)

        # Second loop: the reference forward literally re-applies fcs1[i]
        # for i in range(len(fcs2)).
        for w_ref, b_ref in pre[:num_reused]:
            h = dense(h, w_ref, b_ref)

        # TODO(synk): reference forward is truncated here; finish with the
        # natural output_linear head.
        oup2 = dense(h, w_out_ref, b_out_ref, relu=False, out_dtype=out_ref.dtype)
        out_ref[:, output_dim1:output_dim1 + output_dim2] = oup2

    return kernel


# ----------------------------------------------------------------------------
# Wrapper
# ----------------------------------------------------------------------------
def mlp2_forward(x, condition, params, *, hidden_dim, output_dim1, output_dim2,
                 max_tile_m=2048, compute_dtype=jnp.bfloat16):
    # `condition` accepted to mirror the PyTorch signature; unused by the
    # visible reference forward (fcs2/condition branch is dead for hidden_layers=8).
    del condition
    batch, n_v, input_dim = x.shape
    m = batch * n_v

    fcs1 = params["fcs1"]                      # list of (W(in,out), b(out,))
    w_out, b_out = params["output_linear"]
    num_fcs2 = len(params["fcs2"])             # only the count matters (fcs1 reuse)
    num_pre = len(fcs1) - 1                    # all fcs1 layers but the last

    if num_fcs2 > 0:
        # The reference re-applies fcs1[0] (input_dim -> hidden_dim) to a
        # hidden-width tensor.
        assert input_dim == hidden_dim, "fcs1 reuse requires input_dim == hidden_dim"
    assert num_fcs2 <= num_pre

    # --- tile selection: tall tiles, but always an EVEN grid_m >= 2 so the
    #     "parallel" row axis shards across both v7x TensorCores.  Rows are
    #     zero-padded to tile_m * grid_m (no divisibility restriction).
    max_tile_m = max(_round_up(max_tile_m, 8), 8)
    grid_m = max(2, _cdiv(m, max_tile_m))
    if grid_m % 2:
        grid_m += 1
    tile_m = _round_up(_cdiv(m, grid_m), 8)
    m_padded = tile_m * grid_m

    x2 = x.reshape(m, input_dim)
    if m_padded != m:
        x2 = jnp.pad(x2, ((0, m_padded - m), (0, 0)))

    # --- constant operands: weights in compute dtype, biases in f32 (1, N).
    def prep_w(w):
        return w.astype(compute_dtype)

    def prep_b(b):
        return b.reshape(1, -1).astype(jnp.float32)

    # Keep the last fcs1 layer fused (one matmul + lane slice) whenever its
    # output fits a single MXU result pass on every generation (<=128 lanes);
    # split it wrapper-side otherwise (e.g. hidden 256 + output_dim1).
    fuse_last = (hidden_dim + output_dim1) <= 128

    w_last, b_last = fcs1[num_pre]
    const_arrays = []
    for w, b in fcs1[:num_pre]:
        const_arrays += [prep_w(w), prep_b(b)]
    if fuse_last:
        const_arrays += [prep_w(w_last), prep_b(b_last)]
    else:
        const_arrays += [
            prep_w(w_last[:, :hidden_dim]), prep_b(b_last[:hidden_dim]),   # -> h
            prep_w(w_last[:, hidden_dim:]), prep_b(b_last[hidden_dim:]),   # -> oup1
        ]
    const_arrays += [prep_w(w_out), prep_b(b_out)]

    # --- lane-dense merged output: pad last dim to a multiple of 128.
    out_total = output_dim1 + output_dim2
    out_lanes = _round_up(out_total, 128)
    out_dtype = x.dtype

    # --- VMEM budget: generation-aware cap, never clamped below the estimate.
    comp_itemsize = jnp.dtype(compute_dtype).itemsize
    const_bytes = sum(int(a.size) * a.dtype.itemsize for a in const_arrays)
    widest = max(input_dim, hidden_dim + output_dim1, out_lanes)
    est = int(
        2 * const_bytes                                        # consts (worst case 2x buffered)
        + 2 * tile_m * input_dim * x2.dtype.itemsize           # x tile, double buffered
        + 2 * tile_m * out_lanes * jnp.dtype(out_dtype).itemsize  # out tile, double buffered
        + 4 * tile_m * widest * 4                              # f32 temporaries
        + 4 * tile_m * widest * comp_itemsize                  # compute-dtype activations
    )
    try:
        physical_vmem = int(pltpu.get_tpu_info().vmem_capacity_bytes)
    except Exception:
        physical_vmem = 64 * 1024 * 1024                       # conservative (v7x per-TC)
    cap = int(0.70 * physical_vmem)
    vmem_limit = min(max(2 * est, 32 * 1024 * 1024), cap)
    vmem_limit = max(vmem_limit, est)                          # never below actual need

    kernel = _make_mlp2_kernel(num_pre, num_fcs2, hidden_dim, output_dim1,
                               output_dim2, fuse_last, compute_dtype)

    def build(single_buffer_consts):
        def const_spec(arr):
            nd = arr.ndim
            idx_map = lambda i, _nd=nd: (0,) * _nd
            if single_buffer_consts:
                # Grid-invariant blocks: single buffer, halves resident-const VMEM.
                return pl.BlockSpec(arr.shape, idx_map, pipeline_mode=pl.Buffered(1))
            return pl.BlockSpec(arr.shape, idx_map)

        in_specs = [pl.BlockSpec((tile_m, input_dim), lambda i: (i, 0))]
        in_specs += [const_spec(a) for a in const_arrays]
        return pl.pallas_call(
            kernel,
            out_shape=jax.ShapeDtypeStruct((m_padded, out_lanes), out_dtype),
            grid_spec=pltpu.PrefetchScalarGridSpec(
                num_scalar_prefetch=0,
                grid=(grid_m,),
                in_specs=in_specs,
                out_specs=pl.BlockSpec((tile_m, out_lanes), lambda i: (i, 0)),
            ),
            compiler_params=pltpu.CompilerParams(
                dimension_semantics=("parallel",),
                vmem_limit_bytes=vmem_limit,
            ),
        )

    in_arrays = [x2] + const_arrays
    try:
        merged = build(True)(*in_arrays)
    except Exception:
        # Fallback if this JAX build rejects pipeline_mode=pl.Buffered(1).
        merged = build(False)(*in_arrays)

    oup1 = merged[:m, :output_dim1]
    oup2 = merged[:m, output_dim1:out_total]
    return oup1, oup2


# ----------------------------------------------------------------------------
# Deterministic parameter init (mirrors MLP2.__init__ structure + PyTorch
# Linear default uniform(-1/sqrt(fan_in), 1/sqrt(fan_in)) bounds).
# ----------------------------------------------------------------------------
def init_mlp2_params(key, input_dim, condition_dim, output_dim1, output_dim2,
                     hidden_dim=256, hidden_layers=8):
    mid_layers = math.ceil(hidden_layers / 2.0)
    keys = list(jax.random.split(key, 4 * hidden_layers + 8))

    def linear(fan_in, fan_out):
        kw = keys.pop(0)
        kb = keys.pop(0)
        bound = 1.0 / math.sqrt(fan_in)
        w = jax.random.uniform(kw, (fan_in, fan_out), jnp.float32, -bound, bound)
        b = jax.random.uniform(kb, (fan_out,), jnp.float32, -bound, bound)
        return w, b

    fcs1 = [linear(input_dim, hidden_dim)]
    for i in range(mid_layers):
        if i != mid_layers - 1:
            fcs1.append(linear(hidden_dim, hidden_dim))
        else:
            fcs1.append(linear(hidden_dim, hidden_dim + output_dim1))

    fcs2 = []
    for i in range(mid_layers, hidden_layers - 1):
        if i != 0:
            fcs2.append(linear(hidden_dim, hidden_dim))
        else:  # unreachable for hidden_layers=8, kept for structural fidelity
            fcs2.append(linear(hidden_dim + condition_dim, hidden_dim))

    output_linear = linear(hidden_dim, output_dim2)
    return {"fcs1": fcs1, "fcs2": fcs2, "output_linear": output_linear}


# ----------------------------------------------------------------------------
# Pure-JAX reference (mirrors the PyTorch forward, incl. the fcs1 reuse).
# ----------------------------------------------------------------------------
def mlp2_reference(x, condition, params, *, output_dim1):
    del condition
    b, n, d = x.shape
    h = x.reshape(b * n, d)
    for w, bias in params["fcs1"]:
        h = jnp.maximum(h @ w + bias, 0.0)
    oup1 = h[:, -output_dim1:]
    h = h[:, :-output_dim1]
    for i in range(len(params["fcs2"])):
        w, bias = params["fcs1"][i]
        h = jnp.maximum(h @ w + bias, 0.0)
    w, bias = params["output_linear"]
    oup2 = h @ w + bias
    return oup1, oup2


if __name__ == "__main__":
    hidden_dim = 32
    hidden_layers = 8
    # input_dim must equal hidden_dim because the reference forward re-applies
    # fcs1[0] (in -> hidden) to a hidden-width tensor.
    input_dim = 32
    condition_dim = 8
    output_dim1 = 8
    output_dim2 = 4
    batch, n_v = 2, 64          # rows = 128 -> grid of 2 tall tiles

    key = jax.random.PRNGKey(0)
    kx, kc, kp = jax.random.split(key, 3)
    x = jax.random.normal(kx, (batch, n_v, input_dim), dtype=jnp.float32)
    condition = jax.random.normal(kc, (batch, condition_dim), dtype=jnp.float32)
    params = init_mlp2_params(kp, input_dim, condition_dim, output_dim1,
                              output_dim2, hidden_dim=hidden_dim,
                              hidden_layers=hidden_layers)

    r1, r2 = mlp2_reference(x, condition, params, output_dim1=output_dim1)

    # Default fast path (bf16 MXU inputs, f32 accumulation) — loose tolerance
    # against the f32 reference.
    oup1, oup2 = mlp2_forward(x, condition, params, hidden_dim=hidden_dim,
                              output_dim1=output_dim1, output_dim2=output_dim2)
    jax.block_until_ready((oup1, oup2))
    assert oup1.shape == (batch * n_v, output_dim1)
    assert oup2.shape == (batch * n_v, output_dim2)
    assert jnp.allclose(oup1, r1, atol=1e-1, rtol=1e-1)
    assert jnp.allclose(oup2, r2, atol=1e-1, rtol=1e-1)

    # f32 MXU path — tight numerical check.
    f1, f2 = mlp2_forward(x, condition, params, hidden_dim=hidden_dim,
                          output_dim1=output_dim1, output_dim2=output_dim2,
                          compute_dtype=jnp.float32)
    jax.block_until_ready((f1, f2))
    assert jnp.allclose(f1, r1, atol=1e-5, rtol=1e-5)
    assert jnp.allclose(f2, r2, atol=1e-5, rtol=1e-5)

    print("KERNEL_OK")
</pallas_src>

<mosaic_0001>
module attributes {stable_mosaic.version = 11 : i64} {
  func.func @kernel(%arg0: i32, %arg1: memref<64x32xf32, #tpu.memory_space<vmem>>, %arg2: memref<32x32xbf16, #tpu.memory_space<vmem>>, %arg3: memref<1x32xf32, #tpu.memory_space<vmem>>, %arg4: memref<32x32xbf16, #tpu.memory_space<vmem>>, %arg5: memref<1x32xf32, #tpu.memory_space<vmem>>, %arg6: memref<32x32xbf16, #tpu.memory_space<vmem>>, %arg7: memref<1x32xf32, #tpu.memory_space<vmem>>, %arg8: memref<32x32xbf16, #tpu.memory_space<vmem>>, %arg9: memref<1x32xf32, #tpu.memory_space<vmem>>, %arg10: memref<32x40xbf16, #tpu.memory_space<vmem>>, %arg11: memref<1x40xf32, #tpu.memory_space<vmem>>, %arg12: memref<32x4xbf16, #tpu.memory_space<vmem>>, %arg13: memref<1x4xf32, #tpu.memory_space<vmem>>, %arg14: memref<64x128xf32, #tpu.memory_space<vmem>>) attributes {dimension_semantics = [#tpu.dimension_semantics<parallel>], iteration_bounds = array<i64: 2>, scalar_prefetch = 0 : i64, scratch_operands = 0 : i64, tpu.core_type = #tpu.core_type<tc>, window_params = [{transform_indices = @transform_0, window_bounds = array<i64: 64, 32>}, {pipeline_mode = #tpu.pipeline_mode<synchronous>, transform_indices = @transform_1, window_bounds = array<i64: 32, 32>}, {pipeline_mode = #tpu.pipeline_mode<synchronous>, transform_indices = @transform_2, window_bounds = array<i64: 1, 32>}, {pipeline_mode = #tpu.pipeline_mode<synchronous>, transform_indices = @transform_3, window_bounds = array<i64: 32, 32>}, {pipeline_mode = #tpu.pipeline_mode<synchronous>, transform_indices = @transform_4, window_bounds = array<i64: 1, 32>}, {pipeline_mode = #tpu.pipeline_mode<synchronous>, transform_indices = @transform_5, window_bounds = array<i64: 32, 32>}, {pipeline_mode = #tpu.pipeline_mode<synchronous>, transform_indices = @transform_6, window_bounds = array<i64: 1, 32>}, {pipeline_mode = #tpu.pipeline_mode<synchronous>, transform_indices = @transform_7, window_bounds = array<i64: 32, 32>}, {pipeline_mode = #tpu.pipeline_mode<synchronous>, transform_indices = @transform_8, window_bounds = array<i64: 1, 32>}, {pipeline_mode = #tpu.pipeline_mode<synchronous>, transform_indices = @transform_9, window_bounds = array<i64: 32, 40>}, {pipeline_mode = #tpu.pipeline_mode<synchronous>, transform_indices = @transform_10, window_bounds = array<i64: 1, 40>}, {pipeline_mode = #tpu.pipeline_mode<synchronous>, transform_indices = @transform_11, window_bounds = array<i64: 32, 4>}, {pipeline_mode = #tpu.pipeline_mode<synchronous>, transform_indices = @transform_12, window_bounds = array<i64: 1, 4>}, {transform_indices = @transform_13, window_bounds = array<i64: 64, 128>}]} {
    %c0 = arith.constant 0 : index
    %c0_0 = arith.constant 0 : index
    %0 = vector.load %arg1[%c0, %c0_0] : memref<64x32xf32, #tpu.memory_space<vmem>>, vector<64x32xf32>
    %1 = arith.truncf %0 : vector<64x32xf32> to vector<64x32xbf16>
    %c0_1 = arith.constant 0 : index
    %c0_2 = arith.constant 0 : index
    %2 = vector.load %arg2[%c0_1, %c0_2] : memref<32x32xbf16, #tpu.memory_space<vmem>>, vector<32x32xbf16>
    %cst = arith.constant dense<0.000000e+00> : vector<64x32xf32>
    %3 = tpu.matmul %1, %2, %cst {dimension_numbers = #tpu.dot_dimension_numbers<[1], [0], [0], [1], [0, 0, 1, 1], [], []>} : vector<64x32xbf16>, vector<32x32xbf16>, vector<64x32xf32> -> vector<64x32xf32>
    %c0_3 = arith.constant 0 : index
    %c0_4 = arith.constant 0 : index
    %4 = vector.load %arg3[%c0_3, %c0_4] : memref<1x32xf32, #tpu.memory_space<vmem>>, vector<1x32xf32>
    %5 = vector.broadcast %4 : vector<1x32xf32> to vector<64x32xf32>
    %6 = arith.addf %3, %5 : vector<64x32xf32>
    %cst_5 = arith.constant 0.000000e+00 : f32
    %7 = vector.broadcast %cst_5 : f32 to vector<64x32xf32>
    %8 = arith.maximumf %6, %7 : vector<64x32xf32>
    %9 = arith.truncf %8 : vector<64x32xf32> to vector<64x32xbf16>
    %c0_6 = arith.constant 0 : index
    %c0_7 = arith.constant 0 : index
    %10 = vector.load %arg4[%c0_6, %c0_7] : memref<32x32xbf16, #tpu.memory_space<vmem>>, vector<32x32xbf16>
    %cst_8 = arith.constant dense<0.000000e+00> : vector<64x32xf32>
    %11 = tpu.matmul %9, %10, %cst_8 {dimension_numbers = #tpu.dot_dimension_numbers<[1], [0], [0], [1], [0, 0, 1, 1], [], []>} : vector<64x32xbf16>, vector<32x32xbf16>, vector<64x32xf32> -> vector<64x32xf32>
    %c0_9 = arith.constant 0 : index
    %c0_10 = arith.constant 0 : index
    %12 = vector.load %arg5[%c0_9, %c0_10] : memref<1x32xf32, #tpu.memory_space<vmem>>, vector<1x32xf32>
    %13 = vector.broadcast %12 : vector<1x32xf32> to vector<64x32xf32>
    %14 = arith.addf %11, %13 : vector<64x32xf32>
    %cst_11 = arith.constant 0.000000e+00 : f32
    %15 = vector.broadcast %cst_11 : f32 to vector<64x32xf32>
    %16 = arith.maximumf %14, %15 : vector<64x32xf32>
    %17 = arith.truncf %16 : vector<64x32xf32> to vector<64x32xbf16>
    %c0_12 = arith.constant 0 : index
    %c0_13 = arith.constant 0 : index
    %18 = vector.load %arg6[%c0_12, %c0_13] : memref<32x32xbf16, #tpu.memory_space<vmem>>, vector<32x32xbf16>
    %cst_14 = arith.constant dense<0.000000e+00> : vector<64x32xf32>
    %19 = tpu.matmul %17, %18, %cst_14 {dimension_numbers = #tpu.dot_dimension_numbers<[1], [0], [0], [1], [0, 0, 1, 1], [], []>} : vector<64x32xbf16>, vector<32x32xbf16>, vector<64x32xf32> -> vector<64x32xf32>
    %c0_15 = arith.constant 0 : index
    %c0_16 = arith.constant 0 : index
    %20 = vector.load %arg7[%c0_15, %c0_16] : memref<1x32xf32, #tpu.memory_space<vmem>>, vector<1x32xf32>
    %21 = vector.broadcast %20 : vector<1x32xf32> to vector<64x32xf32>
    %22 = arith.addf %19, %21 : vector<64x32xf32>
    %cst_17 = arith.constant 0.000000e+00 : f32
    %23 = vector.broadcast %cst_17 : f32 to vector<64x32xf32>
    %24 = arith.maximumf %22, %23 : vector<64x32xf32>
    %25 = arith.truncf %24 : vector<64x32xf32> to vector<64x32xbf16>
    %c0_18 = arith.constant 0 : index
    %c0_19 = arith.constant 0 : index
    %26 = vector.load %arg8[%c0_18, %c0_19] : memref<32x32xbf16, #tpu.memory_space<vmem>>, vector<32x32xbf16>
    %cst_20 = arith.constant dense<0.000000e+00> : vector<64x32xf32>
    %27 = tpu.matmul %25, %26, %cst_20 {dimension_numbers = #tpu.dot_dimension_numbers<[1], [0], [0], [1], [0, 0, 1, 1], [], []>} : vector<64x32xbf16>, vector<32x32xbf16>, vector<64x32xf32> -> vector<64x32xf32>
    %c0_21 = arith.constant 0 : index
    %c0_22 = arith.constant 0 : index
    %28 = vector.load %arg9[%c0_21, %c0_22] : memref<1x32xf32, #tpu.memory_space<vmem>>, vector<1x32xf32>
    %29 = vector.broadcast %28 : vector<1x32xf32> to vector<64x32xf32>
    %30 = arith.addf %27, %29 : vector<64x32xf32>
    %cst_23 = arith.constant 0.000000e+00 : f32
    %31 = vector.broadcast %cst_23 : f32 to vector<64x32xf32>
    %32 = arith.maximumf %30, %31 : vector<64x32xf32>
    %33 = arith.truncf %32 : vector<64x32xf32> to vector<64x32xbf16>
    %c0_24 = arith.constant 0 : index
    %c0_25 = arith.constant 0 : index
    %34 = vector.load %arg10[%c0_24, %c0_25] : memref<32x40xbf16, #tpu.memory_space<vmem>>, vector<32x40xbf16>
    %cst_26 = arith.constant dense<0.000000e+00> : vector<64x40xf32>
    %35 = tpu.matmul %33, %34, %cst_26 {dimension_numbers = #tpu.dot_dimension_numbers<[1], [0], [0], [1], [0, 0, 1, 1], [], []>} : vector<64x32xbf16>, vector<32x40xbf16>, vector<64x40xf32> -> vector<64x40xf32>
    %c0_27 = arith.constant 0 : index
    %c0_28 = arith.constant 0 : index
    %36 = vector.load %arg11[%c0_27, %c0_28] : memref<1x40xf32, #tpu.memory_space<vmem>>, vector<1x40xf32>
    %37 = vector.broadcast %36 : vector<1x40xf32> to vector<64x40xf32>
    %38 = arith.addf %35, %37 : vector<64x40xf32>
    %cst_29 = arith.constant 0.000000e+00 : f32
    %39 = vector.broadcast %cst_29 : f32 to vector<64x40xf32>
    %40 = arith.maximumf %38, %39 : vector<64x40xf32>
    %41 = arith.truncf %40 : vector<64x40xf32> to vector<64x40xbf16>
    %42 = vector.extract_strided_slice %41 {offsets = [0, 32], sizes = [64, 8], strides = [1, 1]} : vector<64x40xbf16> to vector<64x8xbf16>
    %43 = vector.extract_strided_slice %41 {offsets = [0, 0], sizes = [64, 32], strides = [1, 1]} : vector<64x40xbf16> to vector<64x32xbf16>
    %44 = arith.extf %42 : vector<64x8xbf16> to vector<64x8xf32>
    %c0_30 = arith.constant 0 : index
    %c0_31 = arith.constant 0 : index
    %45 = vector.load %arg14[%c0_30, %c0_31] : memref<64x128xf32, #tpu.memory_space<vmem>>, vector<64x8xf32>
    tpu.vector_store %arg14[%c0_30, %c0_31], %44 {strides = array<i32>} : memref<64x128xf32, #tpu.memory_space<vmem>>, vector<64x8xf32>,
    %c0_32 = arith.constant 0 : index
    %c0_33 = arith.constant 0 : index
    %46 = vector.load %arg2[%c0_32, %c0_33] : memref<32x32xbf16, #tpu.memory_space<vmem>>, vector<32x32xbf16>
    %cst_34 = arith.constant dense<0.000000e+00> : vector<64x32xf32>
    %47 = tpu.matmul %43, %46, %cst_34 {dimension_numbers = #tpu.dot_dimension_numbers<[1], [0], [0], [1], [0, 0, 1, 1], [], []>} : vector<64x32xbf16>, vector<32x32xbf16>, vector<64x32xf32> -> vector<64x32xf32>
    %c0_35 = arith.constant 0 : index
    %c0_36 = arith.constant 0 : index
    %48 = vector.load %arg3[%c0_35, %c0_36] : memref<1x32xf32, #tpu.memory_space<vmem>>, vector<1x32xf32>
    %49 = vector.broadcast %48 : vector<1x32xf32> to vector<64x32xf32>
    %50 = arith.addf %47, %49 : vector<64x32xf32>
    %cst_37 = arith.constant 0.000000e+00 : f32
    %51 = vector.broadcast %cst_37 : f32 to vector<64x32xf32>
    %52 = arith.maximumf %50, %51 : vector<64x32xf32>
    %53 = arith.truncf %52 : vector<64x32xf32> to vector<64x32xbf16>
    %c0_38 = arith.constant 0 : index
    %c0_39 = arith.constant 0 : index
    %54 = vector.load %arg4[%c0_38, %c0_39] : memref<32x32xbf16, #tpu.memory_space<vmem>>, vector<32x32xbf16>
    %cst_40 = arith.constant dense<0.000000e+00> : vector<64x32xf32>
    %55 = tpu.matmul %53, %54, %cst_40 {dimension_numbers = #tpu.dot_dimension_numbers<[1], [0], [0], [1], [0, 0, 1, 1], [], []>} : vector<64x32xbf16>, vector<32x32xbf16>, vector<64x32xf32> -> vector<64x32xf32>
    %c0_41 = arith.constant 0 : index
    %c0_42 = arith.constant 0 : index
    %56 = vector.load %arg5[%c0_41, %c0_42] : memref<1x32xf32, #tpu.memory_space<vmem>>, vector<1x32xf32>
    %57 = vector.broadcast %56 : vector<1x32xf32> to vector<64x32xf32>
    %58 = arith.addf %55, %57 : vector<64x32xf32>
    %cst_43 = arith.constant 0.000000e+00 : f32
    %59 = vector.broadcast %cst_43 : f32 to vector<64x32xf32>
    %60 = arith.maximumf %58, %59 : vector<64x32xf32>
    %61 = arith.truncf %60 : vector<64x32xf32> to vector<64x32xbf16>
    %c0_44 = arith.constant 0 : index
    %c0_45 = arith.constant 0 : index
    %62 = vector.load %arg6[%c0_44, %c0_45] : memref<32x32xbf16, #tpu.memory_space<vmem>>, vector<32x32xbf16>
    %cst_46 = arith.constant dense<0.000000e+00> : vector<64x32xf32>
    %63 = tpu.matmul %61, %62, %cst_46 {dimension_numbers = #tpu.dot_dimension_numbers<[1], [0], [0], [1], [0, 0, 1, 1], [], []>} : vector<64x32xbf16>, vector<32x32xbf16>, vector<64x32xf32> -> vector<64x32xf32>
    %c0_47 = arith.constant 0 : index
    %c0_48 = arith.constant 0 : index
    %64 = vector.load %arg7[%c0_47, %c0_48] : memref<1x32xf32, #tpu.memory_space<vmem>>, vector<1x32xf32>
    %65 = vector.broadcast %64 : vector<1x32xf32> to vector<64x32xf32>
    %66 = arith.addf %63, %65 : vector<64x32xf32>
    %cst_49 = arith.constant 0.000000e+00 : f32
    %67 = vector.broadcast %cst_49 : f32 to vector<64x32xf32>
    %68 = arith.maximumf %66, %67 : vector<64x32xf32>
    %69 = arith.truncf %68 : vector<64x32xf32> to vector<64x32xbf16>
    %c0_50 = arith.constant 0 : index
    %c0_51 = arith.constant 0 : index
    %70 = vector.load %arg12[%c0_50, %c0_51] : memref<32x4xbf16, #tpu.memory_space<vmem>>, vector<32x4xbf16>
    %cst_52 = arith.constant dense<0.000000e+00> : vector<64x4xf32>
    %71 = tpu.matmul %69, %70, %cst_52 {dimension_numbers = #tpu.dot_dimension_numbers<[1], [0], [0], [1], [0, 0, 1, 1], [], []>} : vector<64x32xbf16>, vector<32x4xbf16>, vector<64x4xf32> -> vector<64x4xf32>
    %c0_53 = arith.constant 0 : index
    %c0_54 = arith.constant 0 : index
    %72 = vector.load %arg13[%c0_53, %c0_54] : memref<1x4xf32, #tpu.memory_space<vmem>>, vector<1x4xf32>
    %73 = vector.broadcast %72 : vector<1x4xf32> to vector<64x4xf32>
    %74 = arith.addf %71, %73 : vector<64x4xf32>
    %c0_55 = arith.constant 0 : index
    %c8 = arith.constant 8 : index
    %75 = vector.load %arg14[%c0_55, %c8] : memref<64x128xf32, #tpu.memory_space<vmem>>, vector<64x4xf32>
    tpu.vector_store %arg14[%c0_55, %c8], %74 {strides = array<i32>} : memref<64x128xf32, #tpu.memory_space<vmem>>, vector<64x4xf32>,
    return
  }
  func.func @transform_0(%arg0: i32) -> (i32, i32) {
    %c0_i32 = arith.constant 0 : i32
    %c0_i32_0 = arith.constant 0 : i32
    return %arg0, %c0_i32 : i32, i32
  }
  func.func @transform_1(%arg0: i32) -> (i32, i32) {
    %c0_i32 = arith.constant 0 : i32
    %c0_i32_0 = arith.constant 0 : i32
    %c0_i32_1 = arith.constant 0 : i32
    return %c0_i32, %c0_i32_0 : i32, i32
  }
  func.func @transform_2(%arg0: i32) -> (i32, i32) {
    %c0_i32 = arith.constant 0 : i32
    %c0_i32_0 = arith.constant 0 : i32
    %c0_i32_1 = arith.constant 0 : i32
    return %c0_i32, %c0_i32_0 : i32, i32
  }
  func.func @transform_3(%arg0: i32) -> (i32, i32) {
    %c0_i32 = arith.constant 0 : i32
    %c0_i32_0 = arith.constant 0 : i32
    %c0_i32_1 = arith.constant 0 : i32
    return %c0_i32, %c0_i32_0 : i32, i32
  }
  func.func @transform_4(%arg0: i32) -> (i32, i32) {
    %c0_i32 = arith.constant 0 : i32
    %c0_i32_0 = arith.constant 0 : i32
    %c0_i32_1 = arith.constant 0 : i32
    return %c0_i32, %c0_i32_0 : i32, i32
  }
  func.func @transform_5(%arg0: i32) -> (i32, i32) {
    %c0_i32 = arith.constant 0 : i32
    %c0_i32_0 = arith.constant 0 : i32
    %c0_i32_1 = arith.constant 0 : i32
    return %c0_i32, %c0_i32_0 : i32, i32
  }
  func.func @transform_6(%arg0: i32) -> (i32, i32) {
    %c0_i32 = arith.constant 0 : i32
    %c0_i32_0 = arith.constant 0 : i32
    %c0_i32_1 = arith.constant 0 : i32
    return %c0_i32, %c0_i32_0 : i32, i32
  }
  func.func @transform_7(%arg0: i32) -> (i32, i32) {
    %c0_i32 = arith.constant 0 : i32
    %c0_i32_0 = arith.constant 0 : i32
    %c0_i32_1 = arith.constant 0 : i32
    return %c0_i32, %c0_i32_0 : i32, i32
  }
  func.func @transform_8(%arg0: i32) -> (i32, i32) {
    %c0_i32 = arith.constant 0 : i32
    %c0_i32_0 = arith.constant 0 : i32
    %c0_i32_1 = arith.constant 0 : i32
    return %c0_i32, %c0_i32_0 : i32, i32
  }
  func.func @transform_9(%arg0: i32) -> (i32, i32) {
    %c0_i32 = arith.constant 0 : i32
    %c0_i32_0 = arith.constant 0 : i32
    %c0_i32_1 = arith.constant 0 : i32
    return %c0_i32, %c0_i32_0 : i32, i32
  }
  func.func @transform_10(%arg0: i32) -> (i32, i32) {
    %c0_i32 = arith.constant 0 : i32
    %c0_i32_0 = arith.constant 0 : i32
    %c0_i32_1 = arith.constant 0 : i32
    return %c0_i32, %c0_i32_0 : i32, i32
  }
  func.func @transform_11(%arg0: i32) -> (i32, i32) {
    %c0_i32 = arith.constant 0 : i32
    %c0_i32_0 = arith.constant 0 : i32
    %c0_i32_1 = arith.constant 0 : i32
    return %c0_i32, %c0_i32_0 : i32, i32
  }
  func.func @transform_12(%arg0: i32) -> (i32, i32) {
    %c0_i32 = arith.constant 0 : i32
    %c0_i32_0 = arith.constant 0 : i32
    %c0_i32_1 = arith.constant 0 : i32
    return %c0_i32, %c0_i32_0 : i32, i32
  }
  func.func @transform_13(%arg0: i32) -> (i32, i32) {
    %c0_i32 = arith.constant 0 : i32
    %c0_i32_0 = arith.constant 0 : i32
    return %arg0, %c0_i32 : i32, i32
  }
}

module attributes {stable_mosaic.version = 11 : i64} {
  func.func @kernel(%arg0: i32, %arg1: memref<64x32xf32, #tpu.memory_space<vmem>>, %arg2: memref<32x32xbf16, #tpu.memory_space<vmem>>, %arg3: memref<1x32xf32, #tpu.memory_space<vmem>>, %arg4: memref<32x32xbf16, #tpu.memory_space<vmem>>, %arg5: memref<1x32xf32, #tpu.memory_space<vmem>>, %arg6: memref<32x32xbf16, #tpu.memory_space<vmem>>, %arg7: memref<1x32xf32, #tpu.memory_space<vmem>>, %arg8: memref<32x32xbf16, #tpu.memory_space<vmem>>, %arg9: memref<1x32xf32, #tpu.memory_space<vmem>>, %arg10: memref<32x40xbf16, #tpu.memory_space<vmem>>, %arg11: memref<1x40xf32, #tpu.memory_space<vmem>>, %arg12: memref<32x4xbf16, #tpu.memory_space<vmem>>, %arg13: memref<1x4xf32, #tpu.memory_space<vmem>>, %arg14: memref<64x128xf32, #tpu.memory_space<vmem>>) attributes {dimension_semantics = [#tpu.dimension_semantics<parallel>], iteration_bounds = array<i64: 2>, scalar_prefetch = 0 : i64, scratch_operands = 0 : i64, tpu.core_type = #tpu.core_type<tc>, window_params = [{transform_indices = @transform_0, window_bounds = array<i64: 64, 32>}, {pipeline_mode = #tpu.pipeline_mode<synchronous>, transform_indices = @transform_1, window_bounds = array<i64: 32, 32>}, {pipeline_mode = #tpu.pipeline_mode<synchronous>, transform_indices = @transform_2, window_bounds = array<i64: 1, 32>}, {pipeline_mode = #tpu.pipeline_mode<synchronous>, transform_indices = @transform_3, window_bounds = array<i64: 32, 32>}, {pipeline_mode = #tpu.pipeline_mode<synchronous>, transform_indices = @transform_4, window_bounds = array<i64: 1, 32>}, {pipeline_mode = #tpu.pipeline_mode<synchronous>, transform_indices = @transform_5, window_bounds = array<i64: 32, 32>}, {pipeline_mode = #tpu.pipeline_mode<synchronous>, transform_indices = @transform_6, window_bounds = array<i64: 1, 32>}, {pipeline_mode = #tpu.pipeline_mode<synchronous>, transform_indices = @transform_7, window_bounds = array<i64: 32, 32>}, {pipeline_mode = #tpu.pipeline_mode<synchronous>, transform_indices = @transform_8, window_bounds = array<i64: 1, 32>}, {pipeline_mode = #tpu.pipeline_mode<synchronous>, transform_indices = @transform_9, window_bounds = array<i64: 32, 40>}, {pipeline_mode = #tpu.pipeline_mode<synchronous>, transform_indices = @transform_10, window_bounds = array<i64: 1, 40>}, {pipeline_mode = #tpu.pipeline_mode<synchronous>, transform_indices = @transform_11, window_bounds = array<i64: 32, 4>}, {pipeline_mode = #tpu.pipeline_mode<synchronous>, transform_indices = @transform_12, window_bounds = array<i64: 1, 4>}, {transform_indices = @transform_13, window_bounds = array<i64: 64, 128>}]} {
    %c0 = arith.constant 0 : index
    %c0_0 = arith.constant 0 : index
    %0 = vector.load %arg1[%c0, %c0_0] : memref<64x32xf32, #tpu.memory_space<vmem>>, vector<64x32xf32>
    %1 = arith.truncf %0 : vector<64x32xf32> to vector<64x32xbf16>
    %c0_1 = arith.constant 0 : index
    %c0_2 = arith.constant 0 : index
    %2 = vector.load %arg2[%c0_1, %c0_2] : memref<32x32xbf16, #tpu.memory_space<vmem>>, vector<32x32xbf16>
    %cst = arith.constant dense<0.000000e+00> : vector<64x32xf32>
    %3 = tpu.matmul %1, %2, %cst {dimension_numbers = #tpu.dot_dimension_numbers<[1], [0], [0], [1], [0, 0, 1, 1], [], []>} : vector<64x32xbf16>, vector<32x32xbf16>, vector<64x32xf32> -> vector<64x32xf32>
    %c0_3 = arith.constant 0 : index
    %c0_4 = arith.constant 0 : index
    %4 = vector.load %arg3[%c0_3, %c0_4] : memref<1x32xf32, #tpu.memory_space<vmem>>, vector<1x32xf32>
    %5 = vector.broadcast %4 : vector<1x32xf32> to vector<64x32xf32>
    %6 = arith.addf %3, %5 : vector<64x32xf32>
    %cst_5 = arith.constant 0.000000e+00 : f32
    %7 = vector.broadcast %cst_5 : f32 to vector<64x32xf32>
    %8 = arith.maximumf %6, %7 : vector<64x32xf32>
    %9 = arith.truncf %8 : vector<64x32xf32> to vector<64x32xbf16>
    %c0_6 = arith.constant 0 : index
    %c0_7 = arith.constant 0 : index
    %10 = vector.load %arg4[%c0_6, %c0_7] : memref<32x32xbf16, #tpu.memory_space<vmem>>, vector<32x32xbf16>
    %cst_8 = arith.constant dense<0.000000e+00> : vector<64x32xf32>
    %11 = tpu.matmul %9, %10, %cst_8 {dimension_numbers = #tpu.dot_dimension_numbers<[1], [0], [0], [1], [0, 0, 1, 1], [], []>} : vector<64x32xbf16>, vector<32x32xbf16>, vector<64x32xf32> -> vector<64x32xf32>
    %c0_9 = arith.constant 0 : index
    %c0_10 = arith.constant 0 : index
    %12 = vector.load %arg5[%c0_9, %c0_10] : memref<1x32xf32, #tpu.memory_space<vmem>>, vector<1x32xf32>
    %13 = vector.broadcast %12 : vector<1x32xf32> to vector<64x32xf32>
    %14 = arith.addf %11, %13 : vector<64x32xf32>
    %cst_11 = arith.constant 0.000000e+00 : f32
    %15 = vector.broadcast %cst_11 : f32 to vector<64x32xf32>
    %16 = arith.maximumf %14, %15 : vector<64x32xf32>
    %17 = arith.truncf %16 : vector<64x32xf32> to vector<64x32xbf16>
    %c0_12 = arith.constant 0 : index
    %c0_13 = arith.constant 0 : index
    %18 = vector.load %arg6[%c0_12, %c0_13] : memref<32x32xbf16, #tpu.memory_space<vmem>>, vector<32x32xbf16>
    %cst_14 = arith.constant dense<0.000000e+00> : vector<64x32xf32>
    %19 = tpu.matmul %17, %18, %cst_14 {dimension_numbers = #tpu.dot_dimension_numbers<[1], [0], [0], [1], [0, 0, 1, 1], [], []>} : vector<64x32xbf16>, vector<32x32xbf16>, vector<64x32xf32> -> vector<64x32xf32>
    %c0_15 = arith.constant 0 : index
    %c0_16 = arith.constant 0 : index
    %20 = vector.load %arg7[%c0_15, %c0_16] : memref<1x32xf32, #tpu.memory_space<vmem>>, vector<1x32xf32>
    %21 = vector.broadcast %20 : vector<1x32xf32> to vector<64x32xf32>
    %22 = arith.addf %19, %21 : vector<64x32xf32>
    %cst_17 = arith.constant 0.000000e+00 : f32
    %23 = vector.broadcast %cst_17 : f32 to vector<64x32xf32>
    %24 = arith.maximumf %22, %23 : vector<64x32xf32>
    %25 = arith.truncf %24 : vector<64x32xf32> to vector<64x32xbf16>
    %c0_18 = arith.constant 0 : index
    %c0_19 = arith.constant 0 : index
    %26 = vector.load %arg8[%c0_18, %c0_19] : memref<32x32xbf16, #tpu.memory_space<vmem>>, vector<32x32xbf16>
    %cst_20 = arith.constant dense<0.000000e+00> : vector<64x32xf32>
    %27 = tpu.matmul %25, %26, %cst_20 {dimension_numbers = #tpu.dot_dimension_numbers<[1], [0], [0], [1], [0, 0, 1, 1], [], []>} : vector<64x32xbf16>, vector<32x32xbf16>, vector<64x32xf32> -> vector<64x32xf32>
    %c0_21 = arith.constant 0 : index
    %c0_22 = arith.constant 0 : index
    %28 = vector.load %arg9[%c0_21, %c0_22] : memref<1x32xf32, #tpu.memory_space<vmem>>, vector<1x32xf32>
    %29 = vector.broadcast %28 : vector<1x32xf32> to vector<64x32xf32>
    %30 = arith.addf %27, %29 : vector<64x32xf32>
    %cst_23 = arith.constant 0.000000e+00 : f32
    %31 = vector.broadcast %cst_23 : f32 to vector<64x32xf32>
    %32 = arith.maximumf %30, %31 : vector<64x32xf32>
    %33 = arith.truncf %32 : vector<64x32xf32> to vector<64x32xbf16>
    %c0_24 = arith.constant 0 : index
    %c0_25 = arith.constant 0 : index
    %34 = vector.load %arg10[%c0_24, %c0_25] : memref<32x40xbf16, #tpu.memory_space<vmem>>, vector<32x40xbf16>
    %cst_26 = arith.constant dense<0.000000e+00> : vector<64x40xf32>
    %35 = tpu.matmul %33, %34, %cst_26 {dimension_numbers = #tpu.dot_dimension_numbers<[1], [0], [0], [1], [0, 0, 1, 1], [], []>} : vector<64x32xbf16>, vector<32x40xbf16>, vector<64x40xf32> -> vector<64x40xf32>
    %c0_27 = arith.constant 0 : index
    %c0_28 = arith.constant 0 : index
    %36 = vector.load %arg11[%c0_27, %c0_28] : memref<1x40xf32, #tpu.memory_space<vmem>>, vector<1x40xf32>
    %37 = vector.broadcast %36 : vector<1x40xf32> to vector<64x40xf32>
    %38 = arith.addf %35, %37 : vector<64x40xf32>
    %cst_29 = arith.constant 0.000000e+00 : f32
    %39 = vector.broadcast %cst_29 : f32 to vector<64x40xf32>
    %40 = arith.maximumf %38, %39 : vector<64x40xf32>
    %41 = arith.truncf %40 : vector<64x40xf32> to vector<64x40xbf16>
    %42 = vector.extract_strided_slice %41 {offsets = [0, 32], sizes = [64, 8], strides = [1, 1]} : vector<64x40xbf16> to vector<64x8xbf16>
    %43 = vector.extract_strided_slice %41 {offsets = [0, 0], sizes = [64, 32], strides = [1, 1]} : vector<64x40xbf16> to vector<64x32xbf16>
    %44 = arith.extf %42 : vector<64x8xbf16> to vector<64x8xf32>
    %c0_30 = arith.constant 0 : index
    %c0_31 = arith.constant 0 : index
    %45 = vector.load %arg14[%c0_30, %c0_31] : memref<64x128xf32, #tpu.memory_space<vmem>>, vector<64x8xf32>
    tpu.vector_store %arg14[%c0_30, %c0_31], %44 {strides = array<i32>} : memref<64x128xf32, #tpu.memory_space<vmem>>, vector<64x8xf32>,
    %c0_32 = arith.constant 0 : index
    %c0_33 = arith.constant 0 : index
    %46 = vector.load %arg2[%c0_32, %c0_33] : memref<32x32xbf16, #tpu.memory_space<vmem>>, vector<32x32xbf16>
    %cst_34 = arith.constant dense<0.000000e+00> : vector<64x32xf32>
    %47 = tpu.matmul %43, %46, %cst_34 {dimension_numbers = #tpu.dot_dimension_numbers<[1], [0], [0], [1], [0, 0, 1, 1], [], []>} : vector<64x32xbf16>, vector<32x32xbf16>, vector<64x32xf32> -> vector<64x32xf32>
    %c0_35 = arith.constant 0 : index
    %c0_36 = arith.constant 0 : index
    %48 = vector.load %arg3[%c0_35, %c0_36] : memref<1x32xf32, #tpu.memory_space<vmem>>, vector<1x32xf32>
    %49 = vector.broadcast %48 : vector<1x32xf32> to vector<64x32xf32>
    %50 = arith.addf %47, %49 : vector<64x32xf32>
    %cst_37 = arith.constant 0.000000e+00 : f32
    %51 = vector.broadcast %cst_37 : f32 to vector<64x32xf32>
    %52 = arith.maximumf %50, %51 : vector<64x32xf32>
    %53 = arith.truncf %52 : vector<64x32xf32> to vector<64x32xbf16>
    %c0_38 = arith.constant 0 : index
    %c0_39 = arith.constant 0 : index
    %54 = vector.load %arg4[%c0_38, %c0_39] : memref<32x32xbf16, #tpu.memory_space<vmem>>, vector<32x32xbf16>
    %cst_40 = arith.constant dense<0.000000e+00> : vector<64x32xf32>
    %55 = tpu.matmul %53, %54, %cst_40 {dimension_numbers = #tpu.dot_dimension_numbers<[1], [0], [0], [1], [0, 0, 1, 1], [], []>} : vector<64x32xbf16>, vector<32x32xbf16>, vector<64x32xf32> -> vector<64x32xf32>
    %c0_41 = arith.constant 0 : index
    %c0_42 = arith.constant 0 : index
    %56 = vector.load %arg5[%c0_41, %c0_42] : memref<1x32xf32, #tpu.memory_space<vmem>>, vector<1x32xf32>
    %57 = vector.broadcast %56 : vector<1x32xf32> to vector<64x32xf32>
    %58 = arith.addf %55, %57 : vector<64x32xf32>
    %cst_43 = arith.constant 0.000000e+00 : f32
    %59 = vector.broadcast %cst_43 : f32 to vector<64x32xf32>
    %60 = arith.maximumf %58, %59 : vector<64x32xf32>
    %61 = arith.truncf %60 : vector<64x32xf32> to vector<64x32xbf16>
    %c0_44 = arith.constant 0 : index
    %c0_45 = arith.constant 0 : index
    %62 = vector.load %arg6[%c0_44, %c0_45] : memref<32x32xbf16, #tpu.memory_space<vmem>>, vector<32x32xbf16>
    %cst_46 = arith.constant dense<0.000000e+00> : vector<64x32xf32>
    %63 = tpu.matmul %61, %62, %cst_46 {dimension_numbers = #tpu.dot_dimension_numbers<[1], [0], [0], [1], [0, 0, 1, 1], [], []>} : vector<64x32xbf16>, vector<32x32xbf16>, vector<64x32xf32> -> vector<64x32xf32>
    %c0_47 = arith.constant 0 : index
    %c0_48 = arith.constant 0 : index
    %64 = vector.load %arg7[%c0_47, %c0_48] : memref<1x32xf32, #tpu.memory_space<vmem>>, vector<1x32xf32>
    %65 = vector.broadcast %64 : vector<1x32xf32> to vector<64x32xf32>
    %66 = arith.addf %63, %65 : vector<64x32xf32>
    %cst_49 = arith.constant 0.000000e+00 : f32
    %67 = vector.broadcast %cst_49 : f32 to vector<64x32xf32>
    %68 = arith.maximumf %66, %67 : vector<64x32xf32>
    %69 = arith.truncf %68 : vector<64x32xf32> to vector<64x32xbf16>
    %c0_50 = arith.constant 0 : index
    %c0_51 = arith.constant 0 : index
    %70 = vector.load %arg12[%c0_50, %c0_51] : memref<32x4xbf16, #tpu.memory_space<vmem>>, vector<32x4xbf16>
    %cst_52 = arith.constant dense<0.000000e+00> : vector<64x4xf32>
    %71 = tpu.matmul %69, %70, %cst_52 {dimension_numbers = #tpu.dot_dimension_numbers<[1], [0], [0], [1], [0, 0, 1, 1], [], []>} : vector<64x32xbf16>, vector<32x4xbf16>, vector<64x4xf32> -> vector<64x4xf32>
    %c0_53 = arith.constant 0 : index
    %c0_54 = arith.constant 0 : index
    %72 = vector.load %arg13[%c0_53, %c0_54] : memref<1x4xf32, #tpu.memory_space<vmem>>, vector<1x4xf32>
    %73 = vector.broadcast %72 : vector<1x4xf32> to vector<64x4xf32>
    %74 = arith.addf %71, %73 : vector<64x4xf32>
    %c0_55 = arith.constant 0 : index
    %c8 = arith.constant 8 : index
    %75 = vector.load %arg14[%c0_55, %c8] : memref<64x128xf32, #tpu.memory_space<vmem>>, vector<64x4xf32>
    tpu.vector_store %arg14[%c0_55, %c8], %74 {strides = array<i32>} : memref<64x128xf32, #tpu.memory_space<vmem>>, vector<64x4xf32>,
    return
  }
  func.func @transform_0(%arg0: i32) -> (i32, i32) {
    %c0_i32 = arith.constant 0 : i32
    %c0_i32_0 = arith.constant 0 : i32
    return %arg0, %c0_i32 : i32, i32
  }
  func.func @transform_1(%arg0: i32) -> (i32, i32) {
    %c0_i32 = arith.constant 0 : i32
    %c0_i32_0 = arith.constant 0 : i32
    %c0_i32_1 = arith.constant 0 : i32
    return %c0_i32, %c0_i32_0 : i32, i32
  }
  func.func @transform_2(%arg0: i32) -> (i32, i32) {
    %c0_i32 = arith.constant 0 : i32
    %c0_i32_0 = arith.constant 0 : i32
    %c0_i32_1 = arith.constant 0 : i32
    return %c0_i32, %c0_i32_0 : i32, i32
  }
  func.func @transform_3(%arg0: i32) -> (i32, i32) {
    %c0_i32 = arith.constant 0 : i32
    %c0_i32_0 = arith.constant 0 : i32
    %c0_i32_1 = arith.constant 0 : i32
    return %c0_i32, %c0_i32_0 : i32, i32
  }
  func.func @transform_4(%arg0: i32) -> (i32, i32) {
    %c0_i32 = arith.constant 0 : i32
    %c0_i32_0 = arith.constant 0 : i32
    %c0_i32_1 = arith.constant 0 : i32
    return %c0_i32, %c0_i32_0 : i32, i32
  }
  func.func @transform_5(%arg0: i32) -> (i32, i32) {
    %c0_i32 = arith.constant 0 : i32
    %c0_i32_0 = arith.constant 0 : i32
    %c0_i32_1 = arith.constant 0 : i32
    return %c0_i32, %c0_i32_0 : i32, i32
  }
  func.func @transform_6(%arg0: i32) -> (i32, i32) {
    %c0_i32 = arith.constant 0 : i32
    %c0_i32_0 = arith.constant 0 : i32
    %c0_i32_1 = arith.constant 0 : i32
    return %c0_i32, %c0_i32_0 : i32, i32
  }
  func.func @transform_7(%arg0: i32) -> (i32, i32) {
    %c0_i32 = arith.constant 0 : i32
    %c0_i32_0 = arith.constant 0 : i32
    %c0_i32_1 = arith.constant 0 : i32
    return %c0_i32, %c0_i32_0 : i32, i32
  }
  func.func @transform_8(%arg0: i32) -> (i32, i32) {
    %c0_i32 = arith.constant 0 : i32
    %c0_i32_0 = arith.constant 0 : i32
    %c0_i32_1 = arith.constant 0 : i32
    return %c0_i32, %c0_i32_0 : i32, i32
  }
  func.func @transform_9(%arg0: i32) -> (i32, i32) {
    %c0_i32 = arith.constant 0 : i32
    %c0_i32_0 = arith.constant 0 : i32
    %c0_i32_1 = arith.constant 0 : i32
    return %c0_i32, %c0_i32_0 : i32, i32
  }
  func.func @transform_10(%arg0: i32) -> (i32, i32) {
    %c0_i32 = arith.constant 0 : i32
    %c0_i32_0 = arith.constant 0 : i32
    %c0_i32_1 = arith.constant 0 : i32
    return %c0_i32, %c0_i32_0 : i32, i32
  }
  func.func @transform_11(%arg0: i32) -> (i32, i32) {
    %c0_i32 = arith.constant 0 : i32
    %c0_i32_0 = arith.constant 0 : i32
    %c0_i32_1 = arith.constant 0 : i32
    return %c0_i32, %c0_i32_0 : i32, i32
  }
  func.func @transform_12(%arg0: i32) -> (i32, i32) {
    %c0_i32 = arith.constant 0 : i32
    %c0_i32_0 = arith.constant 0 : i32
    %c0_i32_1 = arith.constant 0 : i32
    return %c0_i32, %c0_i32_0 : i32, i32
  }
  func.func @transform_13(%arg0: i32) -> (i32, i32) {
    %c0_i32 = arith.constant 0 : i32
    %c0_i32_0 = arith.constant 0 : i32
    return %arg0, %c0_i32 : i32, i32
  }
}

</mosaic_0001>

<bundles_post_ra>
// kernel: tpu_custom_call.1
= control target key start
LH: loop header
LB: loop body
LE: loop exit
PB: predicated region body
PF: predicated region fallthrough
CT: control target
= control target key end

     0   :  { %s1899_s0 = inlined_call_operand.vmem [shape: f32[128,32], index: 0, kind: input, shape index: {}]   ;;  %s1900_s1 = inlined_call_operand.vmem [shape: bf16[32,32], index: 1, kind: input, shape index: {}]   ;;  %s1901_s2 = inlined_call_operand.vmem [shape: f32[1,32], index: 2, kind: input, shape index: {}]   ;;  %s1902_s3 = inlined_call_operand.vmem [shape: bf16[32,32], index: 3, kind: input, shape index: {}]   ;;  %s1903_s4 = inlined_call_operand.vmem [shape: f32[1,32], index: 4, kind: input, shape index: {}]   ;;  %s1904_s5 = inlined_call_operand.vmem [shape: bf16[32,32], index: 5, kind: input, shape index: {}]   ;;  %s1905_s6 = inlined_call_operand.vmem [shape: f32[1,32], index: 6, kind: input, shape index: {}]   ;;  %s1906_s7 = inlined_call_operand.vmem [shape: bf16[32,32], index: 7, kind: input, shape index: {}]   ;;  %s1907_s8 = inlined_call_operand.vmem [shape: f32[1,32], index: 8, kind: input, shape index: {}]   ;;  %s1908_s9 = inlined_call_operand.vmem [shape: bf16[32,40], index: 9, kind: input, shape index: {}]   ;;  %s1909_s10 = inlined_call_operand.vmem [shape: f32[1,40], index: 10, kind: input, shape index: {}]   ;;  %s1910_s11 = inlined_call_operand.vmem [shape: bf16[32,4], index: 11, kind: input, shape index: {}]   ;;  %s1911_s12 = inlined_call_operand.vmem [shape: f32[1,4], index: 12, kind: input, shape index: {}]   ;;  %s1912_s13 = inlined_call_operand.hbm [shape: f32[128,128], index: 13, kind: output, shape index: {}]  }
   0x1   :  { %1914 = sst [smem:[#allocation6_spill]] %s1899_s0 }
   0x2   :  { %1915 = sst [smem:[#allocation7_spill]] %s1900_s1 }
   0x3   :  { %1916 = sst [smem:[#allocation8_spill]] %s1901_s2 }
   0x4   :  { %18 = vsyncpa [#allocation3], 0 }
   0x5   :  { %20 = vsyncpa [#allocation3 + $0x1], 0  ;;  %s1646_s25 = smov 0   ;;  %s1648_s26 = smov 0  }
   0x6   :  { %s1650_s27 = smov 0   ;;  %s1652_s28 = smov 0  }
   0x7 LB: > { %s1667_s29 = sadd.s32 4294967295, %s1571_s28   ;;  %s1293_s30 = sadd.s32 4294967294, %s1571_s28   ;;  %s1571_s28 = sphi %s1652_s28, %s1928_s28   ;;  %s1567_s27 = sphi %s1650_s27, %s1927_s27   ;;  %s1563_s26 = sphi %s1648_s26, %s1926_s26   ;;  %s1559_s25 = sphi %s1646_s25, %s1925_s25  }
   0x8   : > { %s1671_s14 = sadd.s32 1, %s1571_s28   ;;  %s311_s15 = sadd.s32 1, %s1567_s27 }
   0x9   : > { %s308_s16 = ssub.s32 %s1571_s28, %s1671_s14  ;;  %p321_p0 = scmp.ne.s32.totalorder %s1567_s27, %s1563_s26 }
   0xa   : > { %p309_p1 = scmp.eq.s32.totalorder %s308_s16, 0  ;;  %p322_p2 = scmp.eq.s32.totalorder %s1667_s29, 1 }
   0xb   : > { %p327_p3 = scmp.ne.s32.totalorder %s1563_s26, %s1559_s25  ;;  %p328_p4 = scmp.eq.s32.totalorder %s1293_s30, 1 }
   0xc   : > { %s1682_s17 = scalar_select %p309_p1, %s1567_s27, %s311_s15  }
   0xd   : > { %p1684_p5 = por %p322_p2, %p321_p0  ;;  %p1688_p6 = por %p328_p4, %p327_p3 }
   0xe   : > { %1917 = sst [smem:[#allocation5_spill]] %s1682_s17  ;;  %p1296_p7 = scmp.ge.s32.totalorder %s1571_s28, 1 }
   0xf   : > { %p391_p8 = scmp.lt.s32.totalorder %s1571_s28, 3 }
  0x11   : > { %p392_p9 = pnand %p1296_p7, %p391_p8 }
  0x12   : > { %s1920_s1 = sld [smem:[#allocation7_spill]] (!%p392_p9)  ;;  %s1298_s22 = sshll.u32 (!%p392_p9), %s1667_s29, 3 }
  0x13   : > { %395 = sbr.rel (%p392_p9) target bundleno = 1475 (0x5c3), region = 72  ;;  %p436_p10 = scmp.lt.s32.totalorder (!%p392_p9), %s1298_s22, 15 }
  0x14   : > { %s1921_s0 = sld [smem:[#allocation6_spill]] (!%p392_p9)  ;;  %s1573_s23 = smov (!%p392_p9), 96  }
  0x15   : > { %s1922_s2 = sld [smem:[#allocation8_spill]] (!%p392_p9)  ;;  %s1913_s24 = smov (!%p392_p9), 8  }
  0x16   : > { %s1431_s30 = sshll.u32 (!%p392_p9), %s1667_s29, 6 }
  0x18   : > { %v1414_v0 = vld [vmem:[%s1920_s1 + $0x8] sm:$0xff]  ;;  %v1413_v1 = vld [vmem:[%s1920_s1] sm:$0xff]  ;;  %s1930_s22 = smov (!%p436_p10, %s1298_s22), 15  ;;  %vm475_vm0 = vcmask 261120   ;;  %vm865_vm1 = vcmask 64512   ;;  %vm1206_vm2 = vcmask 97344  }
  0x19   : > { %494 = vmatpush.bf16.msra.mxu0 %v1414_v0  ;;  %1432 = vmatpush.bf16.msra.mxu1 %v1414_v0  ;;  %v1416_v2 = vld [vmem:[%s1902_s3 + $0x8] sm:$0xff]  ;;  %s1299_s16 = sshll.u32 %s1930_s22, 3  ;;  %v1415_v15 = vld [vmem:[%s1902_s3] sm:$0xff] }
  0x1a   : > { %1433 = vmatpush.bf16.msra.mxu2 %v1414_v0  ;;  %1434 = vmatpush.bf16.msra.mxu3 %v1414_v0  ;;  %s439_s17 = scalar_lea.vmem %s1921_s0, %s1299_s16  ;;  %v1418_v32 = vld [vmem:[%s1904_s5 + $0x8] sm:$0xff]  ;;  %v1417_v46 = vld [vmem:[%s1904_s5] sm:$0xff]  ;;  %s432_s16 = sand.u32 1, %s1563_s26  }
  0x1b   : > { %v443_v3 = vld [vmem:[%s439_s17] sm:$0xff]  ;;  %v444_v4 = vld [vmem:[%s439_s17 + $0x8] sm:$0xff]  ;;  %v445_v5 = vld [vmem:[%s439_s17 + $0x10] sm:$0xff]  ;;  %s1297_s20 = sshll.u32 %s432_s16, 6 }
  0x1c   : > { %v451_v6 = vpack.c.bf16 %v444_v4, %v443_v3  ;;  %v446_v7 = vld [vmem:[%s439_s17 + $0x18] sm:$0xff]  ;;  %v447_v8 = vld [vmem:[%s439_s17 + $0x20] sm:$0xff]  ;;  %v448_v9 = vld [vmem:[%s439_s17 + $0x28] sm:$0xff]  ;;  %s1786_s21 = scalar_lea.vmem [#allocation2], %s1297_s20  ;;  %s1227_s20 = scalar_lea.hbm %s1912_s13, %s1431_s30 }
  0x1d   : > { %495 = vmatpush.bf16.msra.mxu0 %v1413_v1  ;;  %1435 = vmatpush.bf16.msra.mxu1 %v1413_v1  ;;  %v452_v10 = vpack.c.bf16 %v446_v7, %v445_v5  ;;  %v453_v11 = vpack.c.bf16 %v448_v9, %v447_v8  ;;  %v449_v12 = vld [vmem:[%s439_s17 + $0x30] sm:$0xff]  ;;  %v450_v13 = vld [vmem:[%s439_s17 + $0x38] sm:$0xff]  ;;  %v1500_v17 = vld [vmem:[%s1922_s2] ss:$0 sm:$0xff]  ;;  %s1228_s22 = sshll.u32 %s1786_s21, 4  ;;  %s1529_s30 = scalar_lea.hbm %s1912_s13, 128  ;;  %s1229_s22 = int_to_ptr.vmem [resolvable:$true] %s1228_s22 }
  0x1e   : > { %1436 = vmatpush.bf16.msra.mxu2 %v1413_v1  ;;  %1437 = vmatpush.bf16.msra.mxu3 %v1413_v1  ;;  %v454_v14 = vpack.c.bf16 %v450_v13, %v449_v12  ;;  %v1501_v48 = vld [vmem:[%s1903_s4] ss:$0 sm:$0xff]  ;;  %v1420_v62 = vld [vmem:[%s1906_s7 + $0x8] sm:$0xff] }
  0x1f   : > { %v1419_v13 = vld [vmem:[%s1906_s7] sm:$0xff] }
  0x20   : > { %1308 = vmatmul.msk.bf16.vlgmr.msra.gmra.mxu0 %vm475_vm0, %v451_v6  ;;  %1309 = vmatmul.msk.bf16.vlgmr.msra.gmra.mxu1 %vm475_vm0, %v452_v10 }
  0x21   : > { %567 = vmatpush.bf16.msrb.mxu1 %v1416_v2  ;;  %1310 = vmatmul.msk.bf16.vlgmr.msra.gmra.mxu2 %vm475_vm0, %v453_v11 }
  0x22   : > { %1311 = vmatmul.msk.bf16.vlgmr.msra.gmra.mxu3 %vm475_vm0, %v454_v14  ;;  %640 = vmatpush.bf16.msrb.mxu2 %v1418_v32 }
  0x23   : > { %713 = vmatpush.bf16.msrb.mxu3 %v1420_v62  ;;  %v1423_v62 = vld [vmem:[%s1920_s1] sm:$0xff] }
  0x25   : > { %568 = vmatpush.bf16.msrb.mxu1 %v1415_v15  ;;  %v1502_v15 = vld [vmem:[%s1905_s6] ss:$0 sm:$0xff] }
  0x26   : > { %641 = vmatpush.bf16.msrb.mxu2 %v1417_v46  ;;  %v1503_v46 = vld [vmem:[%s1907_s8] ss:$0 sm:$0xff] }
  0x27   : > { %714 = vmatpush.bf16.msrb.mxu3 %v1419_v13 }
  0x9d   : > { %v497_v16 = vpop.f32.mrf.mxu0  ;;  %v502_v20 = vpop.f32.mrf.mxu1 }
  0x9e   : > { %v498_v18 = vadd.f32 %v1500_v17, %v497_v16  ;;  %v503_v26 = vadd.f32 %v1500_v17, %v502_v20 }
  0xa0   : > { %v517_v22 = vmax.f32 %v498_v18, 0.0  ;;  %v519_v29 = vmax.f32 %v503_v26, 0.0 }
  0xa4   : > { %v507_v28 = vpop.f32.mrf.mxu2 }
  0xa5   : > { %v499_v19 = vpop.f32.mrf.mxu0  ;;  %v504_v25 = vpop.f32.mrf.mxu1  ;;  %v508_v34 = vadd.f32 %v1500_v17, %v507_v28 }
  0xa6   : > { %v500_v21 = vadd.f32 %v1500_v17, %v499_v19  ;;  %v505_v27 = vadd.f32 %v1500_v17, %v504_v25  ;;  %v512_v36 = vpop.f32.mrf.mxu3 }
  0xa7   : > { %v521_v37 = vmax.f32 %v508_v34, 0.0  ;;  %v513_v41 = vadd.f32 %v1500_v17, %v512_v36 }
  0xa8   : > { %v518_v23 = vmax.f32 %v500_v21, 0.0  ;;  %v520_v30 = vmax.f32 %v505_v27, 0.0 }
  0xa9   : > { %v523_v43 = vmax.f32 %v513_v41, 0.0 }
  0xaa   : > { %v525_v24 = vpack.c.bf16 %v518_v23, %v517_v22  ;;  %v526_v31 = vpack.c.bf16 %v520_v30, %v519_v29  ;;  %v1422_v29 = vld [vmem:[%s1908_s9 + $0x8] sm:$0xff] }
  0xab   : > { %786 = vmatpush.bf16.msrb.mxu0 %v1422_v29 }
  0xac   : > { %1320 = vmatmul.msk.bf16.vlgmr.msrb.gmra.mxu1 %vm475_vm0, %v525_v24  ;;  %v509_v33 = vpop.f32.mrf.mxu2 }
  0xad   : > { %v510_v35 = vadd.f32 %v1500_v17, %v509_v33 }
  0xae   : > { %v514_v40 = vpop.f32.mrf.mxu3 }
  0xaf   : > { %v522_v38 = vmax.f32 %v510_v35, 0.0  ;;  %v515_v42 = vadd.f32 %v1500_v17, %v514_v40 }
  0xb1   : > { %v527_v39 = vpack.c.bf16 %v522_v38, %v521_v37  ;;  %v524_v44 = vmax.f32 %v515_v42, 0.0 }
  0xb3   : > { %v528_v45 = vpack.c.bf16 %v524_v44, %v523_v43  ;;  %v1421_v44 = vld [vmem:[%s1908_s9] sm:$0xff] }
  0xb4   : > { %787 = vmatpush.bf16.msrb.mxu0 %v1421_v44 }
  0xbc   : > { %1321 = vmatmul.msk.bf16.gmra.mxu1 %vm475_vm0, %v526_v31 }
  0xcc   : > { %1322 = vmatmul.msk.bf16.gmra.mxu1 %vm475_vm0, %v527_v39 }
  0xdc   : > { %1323 = vmatmul.msk.bf16.gmra.mxu1 %vm475_vm0, %v528_v45 }
 0x129   : > { %v570_v47 = vpop.f32.mrf.mxu1 }
 0x12a   : > { %v571_v49 = vadd.f32 %v1501_v48, %v570_v47 }
 0x12c   : > { %v590_v52 = vmax.f32 %v571_v49, 0.0 }
 0x131   : > { %v572_v50 = vpop.f32.mrf.mxu1 }
 0x132   : > { %v573_v51 = vadd.f32 %v1501_v48, %v572_v50 }
 0x134   : > { %v591_v53 = vmax.f32 %v573_v51, 0.0 }
 0x136   : > { %v598_v54 = vpack.c.bf16 %v591_v53, %v590_v52 }
 0x138   : > { %1332 = vmatmul.msk.bf16.vlgmr.msrb.gmra.mxu2 %vm475_vm0, %v598_v54 }
 0x139   : > { %v575_v55 = vpop.f32.mrf.mxu1 }
 0x13a   : > { %v576_v56 = vadd.f32 %v1501_v48, %v575_v55 }
 0x13c   : > { %v592_v59 = vmax.f32 %v576_v56, 0.0 }
 0x141   : > { %v577_v57 = vpop.f32.mrf.mxu1 }
 0x142   : > { %v578_v58 = vadd.f32 %v1501_v48, %v577_v57 }
 0x144   : > { %v593_v60 = vmax.f32 %v578_v58, 0.0 }
 0x146   : > { %v599_v61 = vpack.c.bf16 %v593_v60, %v592_v59  ;;  %v1424_v60 = vld [vmem:[%s1920_s1 + $0x8] sm:$0xff] }
 0x147   : > { %932 = vmatpush.bf16.msra.mxu1 %v1424_v60 }
 0x148   : > { %1333 = vmatmul.msk.bf16.gmra.mxu2 %vm475_vm0, %v599_v61 }
 0x149   : > { %v580_v63 = vpop.f32.mrf.mxu1 }
 0x14a   : > { %v581_v0 = vadd.f32 %v1501_v48, %v580_v63 }
 0x14b   : > { %933 = vmatpush.bf16.msra.mxu1 %v1423_v62 }
 0x14c   : > { %v594_v3 = vmax.f32 %v581_v0, 0.0 }
 0x151   : > { %v582_v1 = vpop.f32.mrf.mxu1 }
 0x152   : > { %v583_v2 = vadd.f32 %v1501_v48, %v582_v1 }
 0x154   : > { %v595_v4 = vmax.f32 %v583_v2, 0.0 }
 0x156   : > { %v600_v5 = vpack.c.bf16 %v595_v4, %v594_v3 }
 0x158   : > { %1334 = vmatmul.msk.bf16.gmra.mxu2 %vm475_vm0, %v600_v5 }
 0x159   : > { %v585_v6 = vpop.f32.mrf.mxu1 }
 0x15a   : > { %v586_v7 = vadd.f32 %v1501_v48, %v585_v6 }
 0x15c   : > { %v596_v10 = vmax.f32 %v586_v7, 0.0 }
 0x161   : > { %v587_v8 = vpop.f32.mrf.mxu1 }
 0x162   : > { %v588_v9 = vadd.f32 %v1501_v48, %v587_v8 }
 0x164   : > { %v597_v11 = vmax.f32 %v588_v9, 0.0 }
 0x166   : > { %v601_v12 = vpack.c.bf16 %v597_v11, %v596_v10 }
 0x168   : > { %1335 = vmatmul.msk.bf16.gmra.mxu2 %vm475_vm0, %v601_v12  ;;  %v1504_v12 = vld [vmem:[%s1909_s10] ss:$0 sm:$0xff] }
 0x1bb   : > { %v643_v14 = vpop.f32.mrf.mxu2 }
 0x1bc   : > { %v644_v16 = vadd.f32 %v1502_v15, %v643_v14 }
 0x1be   : > { %v663_v19 = vmax.f32 %v644_v16, 0.0 }
 0x1c3   : > { %v645_v17 = vpop.f32.mrf.mxu2 }
 0x1c4   : > { %v646_v18 = vadd.f32 %v1502_v15, %v645_v17 }
 0x1c6   : > { %v664_v20 = vmax.f32 %v646_v18, 0.0 }
 0x1c8   : > { %v671_v21 = vpack.c.bf16 %v664_v20, %v663_v19 }
 0x1ca   : > { %1344 = vmatmul.msk.bf16.vlgmr.msrb.gmra.mxu3 %vm475_vm0, %v671_v21 }
 0x1cb   : > { %v648_v22 = vpop.f32.mrf.mxu2 }
 0x1cc   : > { %v649_v23 = vadd.f32 %v1502_v15, %v648_v22 }
 0x1ce   : > { %v665_v26 = vmax.f32 %v649_v23, 0.0 }
 0x1d3   : > { %v650_v24 = vpop.f32.mrf.mxu2 }
 0x1d4   : > { %v651_v25 = vadd.f32 %v1502_v15, %v650_v24 }
 0x1d6   : > { %v666_v27 = vmax.f32 %v651_v25, 0.0 }
 0x1d8   : > { %v672_v28 = vpack.c.bf16 %v666_v27, %v665_v26 }
 0x1da   : > { %1345 = vmatmul.msk.bf16.gmra.mxu3 %vm475_vm0, %v672_v28 }
 0x1db   : > { %v653_v30 = vpop.f32.mrf.mxu2 }
 0x1dc   : > { %v654_v31 = vadd.f32 %v1502_v15, %v653_v30 }
 0x1de   : > { %v667_v34 = vmax.f32 %v654_v31, 0.0 }
 0x1e3   : > { %v655_v32 = vpop.f32.mrf.mxu2 }
 0x1e4   : > { %v656_v33 = vadd.f32 %v1502_v15, %v655_v32 }
 0x1e6   : > { %v668_v35 = vmax.f32 %v656_v33, 0.0 }
 0x1e8   : > { %v673_v36 = vpack.c.bf16 %v668_v35, %v667_v34 }
 0x1ea   : > { %1346 = vmatmul.msk.bf16.gmra.mxu3 %vm475_vm0, %v673_v36 }
 0x1eb   : > { %v658_v37 = vpop.f32.mrf.mxu2 }
 0x1ec   : > { %v659_v38 = vadd.f32 %v1502_v15, %v658_v37 }
 0x1ee   : > { %v669_v41 = vmax.f32 %v659_v38, 0.0 }
 0x1f3   : > { %v660_v39 = vpop.f32.mrf.mxu2 }
 0x1f4   : > { %v661_v40 = vadd.f32 %v1502_v15, %v660_v39  ;;  %v1426_v39 = vld [vmem:[%s1902_s3 + $0x8] sm:$0xff] }
 0x1f5   : > { %1005 = vmatpush.bf16.msra.mxu2 %v1426_v39 }
 0x1f6   : > { %v670_v42 = vmax.f32 %v661_v40, 0.0  ;;  %v1425_v40 = vld [vmem:[%s1902_s3] sm:$0xff] }
 0x1f8   : > { %v674_v43 = vpack.c.bf16 %v670_v42, %v669_v41 }
 0x1f9   : > { %1006 = vmatpush.bf16.msra.mxu2 %v1425_v40 }
 0x1fa   : > { %1347 = vmatmul.msk.bf16.gmra.mxu3 %vm475_vm0, %v674_v43 }
 0x24d   : > { %v716_v45 = vpop.f32.mrf.mxu3 }
 0x24e   : > { %v717_v47 = vadd.f32 %v1503_v46, %v716_v45 }
 0x250   : > { %v736_v50 = vmax.f32 %v717_v47, 0.0 }
 0x255   : > { %v718_v48 = vpop.f32.mrf.mxu3 }
 0x256   : > { %v719_v49 = vadd.f32 %v1503_v46, %v718_v48 }
 0x258   : > { %v737_v51 = vmax.f32 %v719_v49, 0.0 }
 0x25a   : > { %v744_v52 = vpack.c.bf16 %v737_v51, %v736_v50 }
 0x25c   : > { %1356 = vmatmul.msk.bf16.vlgmr.msrb.gmra.mxu0 %vm475_vm0, %v744_v52 }
 0x25d   : > { %v721_v53 = vpop.f32.mrf.mxu3 }
 0x25e   : > { %v722_v54 = vadd.f32 %v1503_v46, %v721_v53 }
 0x260   : > { %v738_v57 = vmax.f32 %v722_v54, 0.0 }
 0x265   : > { %v723_v55 = vpop.f32.mrf.mxu3 }
 0x266   : > { %v724_v56 = vadd.f32 %v1503_v46, %v723_v55 }
 0x268   : > { %v739_v58 = vmax.f32 %v724_v56, 0.0 }
 0x26a   : > { %v745_v59 = vpack.c.bf16 %v739_v58, %v738_v57 }
 0x26c   : > { %1357 = vmatmul.msk.bf16.gmra.mxu0 %vm475_vm0, %v745_v59 }
 0x26d   : > { %v726_v61 = vpop.f32.mrf.mxu3 }
 0x26e   : > { %v727_v63 = vadd.f32 %v1503_v46, %v726_v61 }
 0x270   : > { %v740_v2 = vmax.f32 %v727_v63, 0.0 }
 0x275   : > { %v728_v0 = vpop.f32.mrf.mxu3 }
 0x276   : > { %v729_v1 = vadd.f32 %v1503_v46, %v728_v0 }
 0x278   : > { %v741_v3 = vmax.f32 %v729_v1, 0.0 }
 0x27a   : > { %v746_v4 = vpack.c.bf16 %v741_v3, %v740_v2  ;;  %v1505_v3 = vld [vmem:[%s1922_s2] ss:$0 sm:$0xff] }
 0x27c   : > { %1358 = vmatmul.msk.bf16.gmra.mxu0 %vm475_vm0, %v746_v4 }
 0x27d   : > { %v731_v5 = vpop.f32.mrf.mxu3 }
 0x27e   : > { %v732_v6 = vadd.f32 %v1503_v46, %v731_v5 }
 0x280   : > { %v742_v9 = vmax.f32 %v732_v6, 0.0 }
 0x285   : > { %v733_v7 = vpop.f32.mrf.mxu3 }
 0x286   : > { %v734_v8 = vadd.f32 %v1503_v46, %v733_v7 }
 0x288   : > { %v743_v10 = vmax.f32 %v734_v8, 0.0 }
 0x28a   : > { %v747_v11 = vpack.c.bf16 %v743_v10, %v742_v9 }
 0x28c   : > { %1359 = vmatmul.msk.bf16.gmra.mxu0 %vm475_vm0, %v747_v11 }
 0x2d9   : > { %v789_v13 = vpop.f32.mrf.mxu0 }
 0x2da   : > { %v790_v14 = vadd.f32 %v1504_v12, %v789_v13 }
 0x2dc   : > { %v809_v15 = vmax.f32 %v790_v14, 0.0 }
 0x2de   : > { %v817_v18 = vpack.c.bf16 %v809_v15, %v809_v15 }
 0x2e0   : > { %v890_v21 = vunpack.c.l.b16 %v817_v18 }
 0x2e1   : > { %v791_v16 = vpop.f32.mrf.mxu0 }
 0x2e2   : > { %v792_v17 = vadd.f32 %v1504_v12, %v791_v16 }
 0x2e4   : > { %v810_v19 = vmax.f32 %v792_v17, 0.0 }
 0x2e6   : > { %v818_v20 = vpack.c.bf16 %v810_v19, %v810_v19  ;;  %v1480_v25 = vpack.i.bf16 %v810_v19, %v809_v15 }
 0x2e8   : > { %v891_v22 = vunpack.c.l.b16 %v818_v20  ;;  %1481 = vrot.lane.b32.xlu0 %v1480_v25, %s1573_s23  ;;  %v1427_v25 = vld [vmem:[%s1904_s5] sm:$0xff] }
 0x2e9   : > { %v794_v23 = vpop.f32.mrf.mxu0 }
 0x2ea   : > { %v898_v24 = vpack.c.b16 %v891_v22, %v890_v21  ;;  %v795_v26 = vadd.f32 %v1504_v12, %v794_v23  ;;  %v1428_v23 = vld [vmem:[%s1904_s5 + $0x8] sm:$0xff] }
 0x2eb   : > { %1078 = vmatpush.bf16.msra.mxu3 %v1428_v23 }
 0x2ec   : > { %1368 = vmatmul.msk.bf16.vlgmr.msra.gmra.mxu1 %vm475_vm0, %v898_v24  ;;  %v811_v27 = vmax.f32 %v795_v26, 0.0 }
 0x2ee   : > { %v819_v30 = vpack.c.bf16 %v811_v27, %v811_v27 }
 0x2ef   : > { %1079 = vmatpush.bf16.msra.mxu3 %v1427_v25 }
 0x2f0   : > { %v892_v33 = vunpack.c.l.b16 %v819_v30 }
 0x2f1   : > { %v796_v28 = vpop.f32.mrf.mxu0 }
 0x2f2   : > { %v797_v29 = vadd.f32 %v1504_v12, %v796_v28 }
 0x2f4   : > { %v812_v31 = vmax.f32 %v797_v29, 0.0 }
 0x2f6   : > { %v820_v32 = vpack.c.bf16 %v812_v31, %v812_v31  ;;  %v1485_v37 = vpack.i.bf16 %v812_v31, %v811_v27 }
 0x2f8   : > { %v893_v34 = vunpack.c.l.b16 %v820_v32  ;;  %1486 = vrot.lane.b32.xlu0 %v1485_v37, %s1573_s23 }
 0x2f9   : > { %v799_v35 = vpop.f32.mrf.mxu0 }
 0x2fa   : > { %v899_v36 = vpack.c.b16 %v893_v34, %v892_v33  ;;  %v800_v38 = vadd.f32 %v1504_v12, %v799_v35 }
 0x2fc   : > { %1369 = vmatmul.msk.bf16.gmra.mxu1 %vm475_vm0, %v899_v36  ;;  %v813_v41 = vmax.f32 %v800_v38, 0.0 }
 0x2fe   : > { %v821_v44 = vpack.c.bf16 %v813_v41, %v813_v41 }
 0x300   : > { %v894_v47 = vunpack.c.l.b16 %v821_v44 }
 0x301   : > { %v801_v42 = vpop.f32.mrf.mxu0 }
 0x302   : > { %v802_v43 = vadd.f32 %v1504_v12, %v801_v42 }
 0x304   : > { %v814_v45 = vmax.f32 %v802_v43, 0.0  ;;  %v1506_v43 = vld [vmem:[%s1903_s4] ss:$0 sm:$0xff] }
 0x306   : > { %v822_v46 = vpack.c.bf16 %v814_v45, %v814_v45  ;;  %v1490_v50 = vpack.i.bf16 %v814_v45, %v813_v41 }
 0x308   : > { %v895_v48 = vunpack.c.l.b16 %v822_v46  ;;  %1491 = vrot.lane.b32.xlu1 %v1490_v50, %s1573_s23 }
 0x309   : > { %v804_v49 = vpop.f32.mrf.mxu0 }
 0x30a   : > { %v900_v51 = vpack.c.b16 %v895_v48, %v894_v47  ;;  %v805_v52 = vadd.f32 %v1504_v12, %v804_v49 }
 0x30c   : > { %1370 = vmatmul.msk.bf16.gmra.mxu1 %vm475_vm0, %v900_v51  ;;  %v815_v53 = vmax.f32 %v805_v52, 0.0 }
 0x30e   : > { %v823_v56 = vpack.c.bf16 %v815_v53, %v815_v53 }
 0x310   : > { %v896_v59 = vunpack.c.l.b16 %v823_v56 }
 0x311   : > { %v806_v54 = vpop.f32.mrf.mxu0 }
 0x312   : > { %v807_v55 = vadd.f32 %v1504_v12, %v806_v54 }
 0x314   : > { %v816_v57 = vmax.f32 %v807_v55, 0.0 }
 0x316   : > { %v824_v58 = vpack.c.bf16 %v816_v57, %v816_v57  ;;  %v1495_v61 = vpack.i.bf16 %v816_v57, %v815_v53  ;;  %v1430_v57 = vld [vmem:[%s1910_s11 + $0x8] sm:$0xff] }
 0x317   : > { %1151 = vmatpush.bf16.msra.mxu0 %v1430_v57 }
 0x318   : > { %v897_v60 = vunpack.c.l.b16 %v824_v58  ;;  %1496 = vrot.lane.b32.xlu1 %v1495_v61, %s1573_s23  ;;  %s1230_s23 = sshll.u32 %s1227_s20, 4  ;;  %s1231_s23 = int_to_ptr.hbm [resolvable:$true] %s1230_s23 }
 0x319   : > { %s1523_s0 = sshra.s32 %s1231_s23, 4  ;;  %s1524_s0 = int_to_ptr.hbm [resolvable:$true] %s1523_s0 }
 0x31a   : > { %v901_v62 = vpack.c.b16 %v897_v60, %v896_v59  ;;  %v1429_v59 = vld [vmem:[%s1910_s11] sm:$0xff]  ;;  %s1525_s1 = scalar_lea.hbm %s1524_s0, 64  ;;  %p1530_p0 = scmp.lt.s32.totalorder %s1524_s0, %s1912_s13 }
 0x31b   : > { %1152 = vmatpush.bf16.msra.mxu0 %v1429_v59  ;;  %p1526_p11 = scmp.ne.s32.totalorder %s1524_s0, %s1525_s1  ;;  %p1531_p1 = scmp.lt.s32.totalorder %s1529_s30, %s1525_s1 }
 0x31c   : > { %1371 = vmatmul.msk.bf16.gmra.mxu1 %vm475_vm0, %v901_v62 }
 0x31d   : > { %p1527_p12 = pnand %p1526_p11, %p1684_p5  ;;  %p1532_p2 = por %p1531_p1, %p1530_p0 }
 0x31f   : > { %p1528_p13 = pneg %p1527_p12 }
 0x321   : > { %p1533_p3 = pnand %p1532_p2, %p1528_p13 }
 0x35a   : > { %v1482_v63 = vpop.permute.xlu0 %1481 }
 0x35b   : > { %v1484_v0 = vunpack.i.h.bf16 %v1482_v63  ;;  %v1483_v1 = vunpack.i.l.bf16 %v1482_v63 }
 0x35d   : > { %866 = vst.msk [vmem:[%s1786_s21] sm:$0xff] %vm865_vm1, %v1483_v1 }
 0x35e   : > { %867 = vst.msk [vmem:[%s1786_s21 + $0x8] sm:$0xff] %vm865_vm1, %v1484_v0 }
 0x369   : > { %v935_v2 = vpop.f32.mrf.mxu1 }
 0x36a   : > { %v1487_v4 = vpop.permute.xlu0 %1486  ;;  %v936_v7 = vadd.f32 %v1505_v3, %v935_v2 }
 0x36b   : > { %v1489_v5 = vunpack.i.h.bf16 %v1487_v4  ;;  %v1488_v6 = vunpack.i.l.bf16 %v1487_v4 }
 0x36c   : > { %v955_v10 = vmax.f32 %v936_v7, 0.0 }
 0x36d   : > { %868 = vst.msk [vmem:[%s1786_s21 + $0x10] sm:$0xff] %vm865_vm1, %v1488_v6 }
 0x36e   : > { %869 = vst.msk [vmem:[%s1786_s21 + $0x18] sm:$0xff] %vm865_vm1, %v1489_v5 }
 0x371   : > { %v937_v8 = vpop.f32.mrf.mxu1 }
 0x372   : > { %v938_v9 = vadd.f32 %v1505_v3, %v937_v8 }
 0x374   : > { %v956_v11 = vmax.f32 %v938_v9, 0.0 }
 0x376   : > { %v963_v12 = vpack.c.bf16 %v956_v11, %v955_v10  ;;  %v1507_v10 = vld [vmem:[%s1905_s6] ss:$0 sm:$0xff] }
 0x378   : > { %1380 = vmatmul.msk.bf16.vlgmr.msra.gmra.mxu2 %vm475_vm0, %v963_v12 }
 0x379   : > { %v940_v13 = vpop.f32.mrf.mxu1 }
 0x37a   : > { %v1492_v14 = vpop.permute.xlu1 %1491  ;;  %v941_v17 = vadd.f32 %v1505_v3, %v940_v13 }
 0x37b   : > { %v1494_v15 = vunpack.i.h.bf16 %v1492_v14  ;;  %v1493_v16 = vunpack.i.l.bf16 %v1492_v14 }
 0x37c   : > { %v957_v20 = vmax.f32 %v941_v17, 0.0 }
 0x37d   : > { %870 = vst.msk [vmem:[%s1786_s21 + $0x20] sm:$0xff] %vm865_vm1, %v1493_v16 }
 0x37e   : > { %871 = vst.msk [vmem:[%s1786_s21 + $0x28] sm:$0xff] %vm865_vm1, %v1494_v15 }
 0x381   : > { %v942_v18 = vpop.f32.mrf.mxu1 }
 0x382   : > { %v943_v19 = vadd.f32 %v1505_v3, %v942_v18 }
 0x384   : > { %v958_v21 = vmax.f32 %v943_v19, 0.0 }
 0x386   : > { %v964_v22 = vpack.c.bf16 %v958_v21, %v957_v20 }
 0x388   : > { %1381 = vmatmul.msk.bf16.gmra.mxu2 %vm475_vm0, %v964_v22 }
 0x389   : > { %v945_v24 = vpop.f32.mrf.mxu1 }
 0x38a   : > { %v1497_v26 = vpop.permute.xlu1 %1496  ;;  %v946_v29 = vadd.f32 %v1505_v3, %v945_v24 }
 0x38b   : > { %v1499_v27 = vunpack.i.h.bf16 %v1497_v26  ;;  %v1498_v28 = vunpack.i.l.bf16 %v1497_v26 }
 0x38c   : > { %v959_v32 = vmax.f32 %v946_v29, 0.0 }
 0x38d   : > { %872 = vst.msk [vmem:[%s1786_s21 + $0x30] sm:$0xff] %vm865_vm1, %v1498_v28 }
 0x38e   : > { %873 = vst.msk [vmem:[%s1786_s21 + $0x38] sm:$0xff] %vm865_vm1, %v1499_v27 }
 0x391   : > { %v947_v30 = vpop.f32.mrf.mxu1 }
 0x392   : > { %v948_v31 = vadd.f32 %v1505_v3, %v947_v30 }
 0x394   : > { %v960_v33 = vmax.f32 %v948_v31, 0.0 }
 0x396   : > { %v965_v34 = vpack.c.bf16 %v960_v33, %v959_v32 }
 0x398   : > { %1382 = vmatmul.msk.bf16.gmra.mxu2 %vm475_vm0, %v965_v34 }
 0x399   : > { %v950_v35 = vpop.f32.mrf.mxu1 }
 0x39a   : > { %v951_v36 = vadd.f32 %v1505_v3, %v950_v35 }
 0x39c   : > { %v961_v39 = vmax.f32 %v951_v36, 0.0 }
 0x3a1   : > { %v952_v37 = vpop.f32.mrf.mxu1 }
 0x3a2   : > { %v953_v38 = vadd.f32 %v1505_v3, %v952_v37 }
 0x3a4   : > { %v962_v40 = vmax.f32 %v953_v38, 0.0  ;;  %v1508_v38 = vld [vmem:[%s1911_s12] ss:$0 sm:$0xff] }
 0x3a6   : > { %v966_v41 = vpack.c.bf16 %v962_v40, %v961_v39 }
 0x3a8   : > { %1383 = vmatmul.msk.bf16.gmra.mxu2 %vm475_vm0, %v966_v41 }
 0x3fb   : > { %v1008_v42 = vpop.f32.mrf.mxu2 }
 0x3fc   : > { %v1009_v44 = vadd.f32 %v1506_v43, %v1008_v42 }
 0x3fe   : > { %v1028_v47 = vmax.f32 %v1009_v44, 0.0 }
 0x403   : > { %v1010_v45 = vpop.f32.mrf.mxu2 }
 0x404   : > { %v1011_v46 = vadd.f32 %v1506_v43, %v1010_v45 }
 0x406   : > { %v1029_v48 = vmax.f32 %v1011_v46, 0.0 }
 0x408   : > { %v1036_v49 = vpack.c.bf16 %v1029_v48, %v1028_v47 }
 0x40a   : > { %1392 = vmatmul.msk.bf16.vlgmr.msra.gmra.mxu3 %vm475_vm0, %v1036_v49 }
 0x40b   : > { %v1013_v50 = vpop.f32.mrf.mxu2 }
 0x40c   : > { %v1014_v51 = vadd.f32 %v1506_v43, %v1013_v50 }
 0x40e   : > { %v1030_v54 = vmax.f32 %v1014_v51, 0.0 }
 0x413   : > { %v1015_v52 = vpop.f32.mrf.mxu2 }
 0x414   : > { %v1016_v53 = vadd.f32 %v1506_v43, %v1015_v52 }
 0x416   : > { %v1031_v55 = vmax.f32 %v1016_v53, 0.0 }
 0x418   : > { %v1037_v56 = vpack.c.bf16 %v1031_v55, %v1030_v54 }
 0x41a   : > { %1393 = vmatmul.msk.bf16.gmra.mxu3 %vm475_vm0, %v1037_v56 }
 0x41b   : > { %v1018_v58 = vpop.f32.mrf.mxu2 }
 0x41c   : > { %v1019_v60 = vadd.f32 %v1506_v43, %v1018_v58 }
 0x41e   : > { %v1032_v63 = vmax.f32 %v1019_v60, 0.0 }
 0x423   : > { %v1020_v61 = vpop.f32.mrf.mxu2 }
 0x424   : > { %v1021_v62 = vadd.f32 %v1506_v43, %v1020_v61 }
 0x426   : > { %v1033_v0 = vmax.f32 %v1021_v62, 0.0 }
 0x428   : > { %v1038_v1 = vpack.c.bf16 %v1033_v0, %v1032_v63 }
 0x42a   : > { %1394 = vmatmul.msk.bf16.gmra.mxu3 %vm475_vm0, %v1038_v1 }
 0x42b   : > { %v1023_v2 = vpop.f32.mrf.mxu2 }
 0x42c   : > { %v1024_v3 = vadd.f32 %v1506_v43, %v1023_v2 }
 0x42e   : > { %v1034_v6 = vmax.f32 %v1024_v3, 0.0 }
 0x433   : > { %v1025_v4 = vpop.f32.mrf.mxu2 }
 0x434   : > { %v1026_v5 = vadd.f32 %v1506_v43, %v1025_v4 }
 0x436   : > { %v1035_v7 = vmax.f32 %v1026_v5, 0.0 }
 0x438   : > { %v1039_v8 = vpack.c.bf16 %v1035_v7, %v1034_v6 }
 0x43a   : > { %1395 = vmatmul.msk.bf16.gmra.mxu3 %vm475_vm0, %v1039_v8 }
 0x48d   : > { %v1081_v9 = vpop.f32.mrf.mxu3 }
 0x48e   : > { %v1082_v11 = vadd.f32 %v1507_v10, %v1081_v9 }
 0x490   : > { %v1101_v14 = vmax.f32 %v1082_v11, 0.0 }
 0x495   : > { %v1083_v12 = vpop.f32.mrf.mxu3 }
 0x496   : > { %v1084_v13 = vadd.f32 %v1507_v10, %v1083_v12 }
 0x498   : > { %v1102_v15 = vmax.f32 %v1084_v13, 0.0 }
 0x49a   : > { %v1109_v16 = vpack.c.bf16 %v1102_v15, %v1101_v14 }
 0x49c   : > { %1404 = vmatmul.msk.bf16.vlgmr.msra.gmra.mxu0 %vm475_vm0, %v1109_v16 }
 0x49d   : > { %v1086_v17 = vpop.f32.mrf.mxu3 }
 0x49e   : > { %v1087_v18 = vadd.f32 %v1507_v10, %v1086_v17 }
 0x4a0   : > { %v1103_v21 = vmax.f32 %v1087_v18, 0.0 }
 0x4a5   : > { %v1088_v19 = vpop.f32.mrf.mxu3 }
 0x4a6   : > { %v1089_v20 = vadd.f32 %v1507_v10, %v1088_v19 }
 0x4a8   : > { %v1104_v22 = vmax.f32 %v1089_v20, 0.0 }
 0x4aa   : > { %v1110_v23 = vpack.c.bf16 %v1104_v22, %v1103_v21 }
 0x4ac   : > { %1405 = vmatmul.msk.bf16.gmra.mxu0 %vm475_vm0, %v1110_v23 }
 0x4ad   : > { %v1091_v24 = vpop.f32.mrf.mxu3 }
 0x4ae   : > { %v1092_v25 = vadd.f32 %v1507_v10, %v1091_v24 }
 0x4b0   : > { %v1105_v28 = vmax.f32 %v1092_v25, 0.0 }
 0x4b5   : > { %v1093_v26 = vpop.f32.mrf.mxu3 }
 0x4b6   : > { %v1094_v27 = vadd.f32 %v1507_v10, %v1093_v26 }
 0x4b8   : > { %v1106_v29 = vmax.f32 %v1094_v27, 0.0 }
 0x4ba   : > { %v1111_v30 = vpack.c.bf16 %v1106_v29, %v1105_v28 }
 0x4bc   : > { %1406 = vmatmul.msk.bf16.gmra.mxu0 %vm475_vm0, %v1111_v30 }
 0x4bd   : > { %v1096_v31 = vpop.f32.mrf.mxu3 }
 0x4be   : > { %v1097_v32 = vadd.f32 %v1507_v10, %v1096_v31 }
 0x4c0   : > { %v1107_v35 = vmax.f32 %v1097_v32, 0.0 }
 0x4c5   : > { %v1098_v33 = vpop.f32.mrf.mxu3 }
 0x4c6   : > { %v1099_v34 = vadd.f32 %v1507_v10, %v1098_v33 }
 0x4c8   : > { %v1108_v36 = vmax.f32 %v1099_v34, 0.0 }
 0x4ca   : > { %v1112_v37 = vpack.c.bf16 %v1108_v36, %v1107_v35 }
 0x4cc   : > { %1407 = vmatmul.msk.bf16.gmra.mxu0 %vm475_vm0, %v1112_v37 }
 0x519   : > { %v1154_v39 = vpop.f32.mrf.mxu0 }
 0x51a   : > { %v1155_v40 = vadd.f32 %v1508_v38, %v1154_v39 }
 0x51c   : > { %1182 = vrot.lane.b32.xlu2 %v1155_v40, %s1913_s24 }
 0x521   : > { %v1156_v41 = vpop.f32.mrf.mxu0 }
 0x522   : > { %v1157_v42 = vadd.f32 %v1508_v38, %v1156_v41 }
 0x524   : > { %1184 = vrot.lane.b32.xlu2 %v1157_v42, %s1913_s24 }
 0x529   : > { %v1159_v43 = vpop.f32.mrf.mxu0 }
 0x52a   : > { %v1160_v44 = vadd.f32 %v1508_v38, %v1159_v43 }
 0x52c   : > { %1186 = vrot.lane.b32.xlu0 %v1160_v44, %s1913_s24 }
 0x531   : > { %v1161_v45 = vpop.f32.mrf.mxu0 }
 0x532   : > { %v1162_v46 = vadd.f32 %v1508_v38, %v1161_v45 }
 0x534   : > { %1188 = vrot.lane.b32.xlu1 %v1162_v46, %s1913_s24 }
 0x539   : > { %v1164_v47 = vpop.f32.mrf.mxu0 }
 0x53a   : > { %v1165_v48 = vadd.f32 %v1508_v38, %v1164_v47 }
 0x53c   : > { %1190 = vrot.lane.b32.xlu2 %v1165_v48, %s1913_s24 }
 0x541   : > { %v1166_v49 = vpop.f32.mrf.mxu0 }
 0x542   : > { %v1167_v50 = vadd.f32 %v1508_v38, %v1166_v49 }
 0x544   : > { %1192 = vrot.lane.b32.xlu0 %v1167_v50, %s1913_s24 }
 0x549   : > { %v1169_v51 = vpop.f32.mrf.mxu0 }
 0x54a   : > { %v1170_v52 = vadd.f32 %v1508_v38, %v1169_v51 }
 0x54c   : > { %1194 = vrot.lane.b32.xlu1 %v1170_v52, %s1913_s24 }
 0x551   : > { %v1171_v53 = vpop.f32.mrf.mxu0 }
 0x552   : > { %v1172_v54 = vadd.f32 %v1508_v38, %v1171_v53 }
 0x554   : > { %1196 = vrot.lane.b32.xlu2 %v1172_v54, %s1913_s24  ;;  %s1216_s24 = scalar_lea.sflag [#allocation3], %s432_s16 }
 0x576   : > { %v1183_v55 = vpop.permute.xlu2 %1182 }
 0x577   : > { %1207 = vst.msk [vmem:[%s1786_s21] sm:$0xff] %vm1206_vm2, %v1183_v55 }
 0x57e   : > { %v1185_v56 = vpop.permute.xlu2 %1184 }
 0x57f   : > { %1208 = vst.msk [vmem:[%s1786_s21 + $0x8] sm:$0xff] %vm1206_vm2, %v1185_v56 }
 0x596   : > { %v1191_v57 = vpop.permute.xlu2 %1190 }
 0x597   : > { %1211 = vst.msk [vmem:[%s1786_s21 + $0x20] sm:$0xff] %vm1206_vm2, %v1191_v57 }
 0x59e   : > { %v1187_v58 = vpop.permute.xlu0 %1186 }
 0x59f   : > { %1209 = vst.msk [vmem:[%s1786_s21 + $0x10] sm:$0xff] %vm1206_vm2, %v1187_v58 }
 0x5a6   : > { %v1189_v59 = vpop.permute.xlu1 %1188 }
 0x5a7   : > { %1210 = vst.msk [vmem:[%s1786_s21 + $0x18] sm:$0xff] %vm1206_vm2, %v1189_v59 }
 0x5ae   : > { %v1197_v60 = vpop.permute.xlu2 %1196 }
 0x5af   : > { %1214 = vst.msk [vmem:[%s1786_s21 + $0x38] sm:$0xff] %vm1206_vm2, %v1197_v60 }
 0x5b6   : > { %v1193_v61 = vpop.permute.xlu0 %1192 }
 0x5b7   : > { %1212 = vst.msk [vmem:[%s1786_s21 + $0x28] sm:$0xff] %vm1206_vm2, %v1193_v61 }
 0x5be   : > { %v1195_v62 = vpop.permute.xlu1 %1194 }
 0x5bf   : > { %1213 = vst.msk [vmem:[%s1786_s21 + $0x30] sm:$0xff] %vm1206_vm2, %v1195_v62 }
 0x5c0   : > { %1536 = shalt.err (!%p1533_p3)
}
 0x5c1   : > { %s1575_s16 = smov 128   ;;  %s1923_s21 = smov 8  }
 0x5c2   : > { %1438 = dma.vmem_to_hbm [thread:$0]  (%p1684_p5), %s1229_s22, 1024, %s1231_s23, %s1216_s24, %s1575_s16, %s1575_s16, %s1923_s21  }
 0x5c3 PF: > { %p1444_p4 = scmp.ge.s32.totalorder %s1571_s28, 2  ;;  %s1245_s2 = sand.u32 1, %s1559_s25  }
 0x5c4   : > { %s1246_s20 = scalar_lea.sflag [#allocation3], %s1245_s2 }
 0x5c5   : > { %p1441_p7 = pnand %p1444_p4, %p1688_p6 }
 0x5c7   : > { %p1442_p8 = pneg %p1441_p7 }
 0x5c9   : > { %1554 = dma.done.wait (%p1442_p8), %s1246_s20, 1024  }
 0x5ca   : > { %1556 = vsyncadd (%p1442_p8), %s1246_s20, 4294966272  ;;  %s1924_s0 = sld [smem:[#allocation5_spill]]  ;;  %p23_p9 = scmp.ge.s32.totalorder %s1671_s14, 4  }
 0x5cb   : > { %s1925_s25 = smov %s1563_s26  ;;  %s1926_s26 = smov %s1567_s27 }
 0x5cc   : > { %s1928_s28 = smov %s1671_s14  ;;  %25 = sbr.rel (!%p23_p9) target bundleno = 7 (0x7), region = 107 }
 0x5d0   : > { %s1927_s27 = smov %s1924_s0 }
 0x5d1   :  { %1252 = vsyncpa [#allocation3], 1 }
 0x5d2   :  { %1254 = vsyncpa [#allocation3 + $0x1], 1 }

// kernel: tpu_custom_call.1
= control target key start
LH: loop header
LB: loop body
LE: loop exit
PB: predicated region body
PF: predicated region fallthrough
CT: control target
= control target key end

     0   :  { %s1899_s0 = inlined_call_operand.vmem [shape: f32[128,32], index: 0, kind: input, shape index: {}]   ;;  %s1900_s1 = inlined_call_operand.vmem [shape: bf16[32,32], index: 1, kind: input, shape index: {}]   ;;  %s1901_s2 = inlined_call_operand.vmem [shape: f32[1,32], index: 2, kind: input, shape index: {}]   ;;  %s1902_s3 = inlined_call_operand.vmem [shape: bf16[32,32], index: 3, kind: input, shape index: {}]   ;;  %s1903_s4 = inlined_call_operand.vmem [shape: f32[1,32], index: 4, kind: input, shape index: {}]   ;;  %s1904_s5 = inlined_call_operand.vmem [shape: bf16[32,32], index: 5, kind: input, shape index: {}]   ;;  %s1905_s6 = inlined_call_operand.vmem [shape: f32[1,32], index: 6, kind: input, shape index: {}]   ;;  %s1906_s7 = inlined_call_operand.vmem [shape: bf16[32,32], index: 7, kind: input, shape index: {}]   ;;  %s1907_s8 = inlined_call_operand.vmem [shape: f32[1,32], index: 8, kind: input, shape index: {}]   ;;  %s1908_s9 = inlined_call_operand.vmem [shape: bf16[32,40], index: 9, kind: input, shape index: {}]   ;;  %s1909_s10 = inlined_call_operand.vmem [shape: f32[1,40], index: 10, kind: input, shape index: {}]   ;;  %s1910_s11 = inlined_call_operand.vmem [shape: bf16[32,4], index: 11, kind: input, shape index: {}]   ;;  %s1911_s12 = inlined_call_operand.vmem [shape: f32[1,4], index: 12, kind: input, shape index: {}]   ;;  %s1912_s13 = inlined_call_operand.hbm [shape: f32[128,128], index: 13, kind: output, shape index: {}]  }
   0x1   :  { %1914 = sst [smem:[#allocation6_spill]] %s1899_s0 }
   0x2   :  { %1915 = sst [smem:[#allocation7_spill]] %s1900_s1 }
   0x3   :  { %1916 = sst [smem:[#allocation8_spill]] %s1901_s2 }
   0x4   :  { %18 = vsyncpa [#allocation3], 0 }
   0x5   :  { %20 = vsyncpa [#allocation3 + $0x1], 0  ;;  %s1646_s25 = smov 0   ;;  %s1648_s26 = smov 0  }
   0x6   :  { %s1650_s27 = smov 0   ;;  %s1652_s28 = smov 0  }
   0x7 LB: > { %s1667_s29 = sadd.s32 4294967295, %s1571_s28   ;;  %s1293_s30 = sadd.s32 4294967294, %s1571_s28   ;;  %s1571_s28 = sphi %s1652_s28, %s1928_s28   ;;  %s1567_s27 = sphi %s1650_s27, %s1927_s27   ;;  %s1563_s26 = sphi %s1648_s26, %s1926_s26   ;;  %s1559_s25 = sphi %s1646_s25, %s1925_s25  }
   0x8   : > { %s1671_s14 = sadd.s32 1, %s1571_s28   ;;  %s311_s15 = sadd.s32 1, %s1567_s27 }
   0x9   : > { %s308_s16 = ssub.s32 %s1571_s28, %s1671_s14  ;;  %p321_p0 = scmp.ne.s32.totalorder %s1567_s27, %s1563_s26 }
   0xa   : > { %p309_p1 = scmp.eq.s32.totalorder %s308_s16, 0  ;;  %p322_p2 = scmp.eq.s32.totalorder %s1667_s29, 1 }
   0xb   : > { %p327_p3 = scmp.ne.s32.totalorder %s1563_s26, %s1559_s25  ;;  %p328_p4 = scmp.eq.s32.totalorder %s1293_s30, 1 }
   0xc   : > { %s1682_s17 = scalar_select %p309_p1, %s1567_s27, %s311_s15  }
   0xd   : > { %p1684_p5 = por %p322_p2, %p321_p0  ;;  %p1688_p6 = por %p328_p4, %p327_p3 }
   0xe   : > { %1917 = sst [smem:[#allocation5_spill]] %s1682_s17  ;;  %p1296_p7 = scmp.ge.s32.totalorder %s1571_s28, 1 }
   0xf   : > { %p391_p8 = scmp.lt.s32.totalorder %s1571_s28, 3 }
  0x11   : > { %p392_p9 = pnand %p1296_p7, %p391_p8 }
  0x12   : > { %s1920_s1 = sld [smem:[#allocation7_spill]] (!%p392_p9)  ;;  %s1298_s22 = sshll.u32 (!%p392_p9), %s1667_s29, 3 }
  0x13   : > { %395 = sbr.rel (%p392_p9) target bundleno = 1475 (0x5c3), region = 72  ;;  %p436_p10 = scmp.lt.s32.totalorder (!%p392_p9), %s1298_s22, 15 }
  0x14   : > { %s1921_s0 = sld [smem:[#allocation6_spill]] (!%p392_p9)  ;;  %s1573_s23 = smov (!%p392_p9), 96  }
  0x15   : > { %s1922_s2 = sld [smem:[#allocation8_spill]] (!%p392_p9)  ;;  %s1913_s24 = smov (!%p392_p9), 8  }
  0x16   : > { %s1431_s30 = sshll.u32 (!%p392_p9), %s1667_s29, 6 }
  0x18   : > { %v1414_v0 = vld [vmem:[%s1920_s1 + $0x8] sm:$0xff]  ;;  %v1413_v1 = vld [vmem:[%s1920_s1] sm:$0xff]  ;;  %s1930_s22 = smov (!%p436_p10, %s1298_s22), 15  ;;  %vm475_vm0 = vcmask 261120   ;;  %vm865_vm1 = vcmask 64512   ;;  %vm1206_vm2 = vcmask 97344  }
  0x19   : > { %494 = vmatpush.bf16.msra.mxu0 %v1414_v0  ;;  %1432 = vmatpush.bf16.msra.mxu1 %v1414_v0  ;;  %v1416_v2 = vld [vmem:[%s1902_s3 + $0x8] sm:$0xff]  ;;  %s1299_s16 = sshll.u32 %s1930_s22, 3  ;;  %v1415_v15 = vld [vmem:[%s1902_s3] sm:$0xff] }
  0x1a   : > { %1433 = vmatpush.bf16.msra.mxu2 %v1414_v0  ;;  %1434 = vmatpush.bf16.msra.mxu3 %v1414_v0  ;;  %s439_s17 = scalar_lea.vmem %s1921_s0, %s1299_s16  ;;  %v1418_v32 = vld [vmem:[%s1904_s5 + $0x8] sm:$0xff]  ;;  %v1417_v46 = vld [vmem:[%s1904_s5] sm:$0xff]  ;;  %s432_s16 = sand.u32 1, %s1563_s26  }
  0x1b   : > { %v443_v3 = vld [vmem:[%s439_s17] sm:$0xff]  ;;  %v444_v4 = vld [vmem:[%s439_s17 + $0x8] sm:$0xff]  ;;  %v445_v5 = vld [vmem:[%s439_s17 + $0x10] sm:$0xff]  ;;  %s1297_s20 = sshll.u32 %s432_s16, 6 }
  0x1c   : > { %v451_v6 = vpack.c.bf16 %v444_v4, %v443_v3  ;;  %v446_v7 = vld [vmem:[%s439_s17 + $0x18] sm:$0xff]  ;;  %v447_v8 = vld [vmem:[%s439_s17 + $0x20] sm:$0xff]  ;;  %v448_v9 = vld [vmem:[%s439_s17 + $0x28] sm:$0xff]  ;;  %s1786_s21 = scalar_lea.vmem [#allocation2], %s1297_s20  ;;  %s1227_s20 = scalar_lea.hbm %s1912_s13, %s1431_s30 }
  0x1d   : > { %495 = vmatpush.bf16.msra.mxu0 %v1413_v1  ;;  %1435 = vmatpush.bf16.msra.mxu1 %v1413_v1  ;;  %v452_v10 = vpack.c.bf16 %v446_v7, %v445_v5  ;;  %v453_v11 = vpack.c.bf16 %v448_v9, %v447_v8  ;;  %v449_v12 = vld [vmem:[%s439_s17 + $0x30] sm:$0xff]  ;;  %v450_v13 = vld [vmem:[%s439_s17 + $0x38] sm:$0xff]  ;;  %v1500_v17 = vld [vmem:[%s1922_s2] ss:$0 sm:$0xff]  ;;  %s1228_s22 = sshll.u32 %s1786_s21, 4  ;;  %s1529_s30 = scalar_lea.hbm %s1912_s13, 128  ;;  %s1229_s22 = int_to_ptr.vmem [resolvable:$true] %s1228_s22 }
  0x1e   : > { %1436 = vmatpush.bf16.msra.mxu2 %v1413_v1  ;;  %1437 = vmatpush.bf16.msra.mxu3 %v1413_v1  ;;  %v454_v14 = vpack.c.bf16 %v450_v13, %v449_v12  ;;  %v1501_v48 = vld [vmem:[%s1903_s4] ss:$0 sm:$0xff]  ;;  %v1420_v62 = vld [vmem:[%s1906_s7 + $0x8] sm:$0xff] }
  0x1f   : > { %v1419_v13 = vld [vmem:[%s1906_s7] sm:$0xff] }
  0x20   : > { %1308 = vmatmul.msk.bf16.vlgmr.msra.gmra.mxu0 %vm475_vm0, %v451_v6  ;;  %1309 = vmatmul.msk.bf16.vlgmr.msra.gmra.mxu1 %vm475_vm0, %v452_v10 }
  0x21   : > { %567 = vmatpush.bf16.msrb.mxu1 %v1416_v2  ;;  %1310 = vmatmul.msk.bf16.vlgmr.msra.gmra.mxu2 %vm475_vm0, %v453_v11 }
  0x22   : > { %1311 = vmatmul.msk.bf16.vlgmr.msra.gmra.mxu3 %vm475_vm0, %v454_v14  ;;  %640 = vmatpush.bf16.msrb.mxu2 %v1418_v32 }
  0x23   : > { %713 = vmatpush.bf16.msrb.mxu3 %v1420_v62  ;;  %v1423_v62 = vld [vmem:[%s1920_s1] sm:$0xff] }
  0x25   : > { %568 = vmatpush.bf16.msrb.mxu1 %v1415_v15  ;;  %v1502_v15 = vld [vmem:[%s1905_s6] ss:$0 sm:$0xff] }
  0x26   : > { %641 = vmatpush.bf16.msrb.mxu2 %v1417_v46  ;;  %v1503_v46 = vld [vmem:[%s1907_s8] ss:$0 sm:$0xff] }
  0x27   : > { %714 = vmatpush.bf16.msrb.mxu3 %v1419_v13 }
  0x9d   : > { %v497_v16 = vpop.f32.mrf.mxu0  ;;  %v502_v20 = vpop.f32.mrf.mxu1 }
  0x9e   : > { %v498_v18 = vadd.f32 %v1500_v17, %v497_v16  ;;  %v503_v26 = vadd.f32 %v1500_v17, %v502_v20 }
  0xa0   : > { %v517_v22 = vmax.f32 %v498_v18, 0.0  ;;  %v519_v29 = vmax.f32 %v503_v26, 0.0 }
  0xa4   : > { %v507_v28 = vpop.f32.mrf.mxu2 }
  0xa5   : > { %v499_v19 = vpop.f32.mrf.mxu0  ;;  %v504_v25 = vpop.f32.mrf.mxu1  ;;  %v508_v34 = vadd.f32 %v1500_v17, %v507_v28 }
  0xa6   : > { %v500_v21 = vadd.f32 %v1500_v17, %v499_v19  ;;  %v505_v27 = vadd.f32 %v1500_v17, %v504_v25  ;;  %v512_v36 = vpop.f32.mrf.mxu3 }
  0xa7   : > { %v521_v37 = vmax.f32 %v508_v34, 0.0  ;;  %v513_v41 = vadd.f32 %v1500_v17, %v512_v36 }
  0xa8   : > { %v518_v23 = vmax.f32 %v500_v21, 0.0  ;;  %v520_v30 = vmax.f32 %v505_v27, 0.0 }
  0xa9   : > { %v523_v43 = vmax.f32 %v513_v41, 0.0 }
  0xaa   : > { %v525_v24 = vpack.c.bf16 %v518_v23, %v517_v22  ;;  %v526_v31 = vpack.c.bf16 %v520_v30, %v519_v29  ;;  %v1422_v29 = vld [vmem:[%s1908_s9 + $0x8] sm:$0xff] }
  0xab   : > { %786 = vmatpush.bf16.msrb.mxu0 %v1422_v29 }
  0xac   : > { %1320 = vmatmul.msk.bf16.vlgmr.msrb.gmra.mxu1 %vm475_vm0, %v525_v24  ;;  %v509_v33 = vpop.f32.mrf.mxu2 }
  0xad   : > { %v510_v35 = vadd.f32 %v1500_v17, %v509_v33 }
  0xae   : > { %v514_v40 = vpop.f32.mrf.mxu3 }
  0xaf   : > { %v522_v38 = vmax.f32 %v510_v35, 0.0  ;;  %v515_v42 = vadd.f32 %v1500_v17, %v514_v40 }
  0xb1   : > { %v527_v39 = vpack.c.bf16 %v522_v38, %v521_v37  ;;  %v524_v44 = vmax.f32 %v515_v42, 0.0 }
  0xb3   : > { %v528_v45 = vpack.c.bf16 %v524_v44, %v523_v43  ;;  %v1421_v44 = vld [vmem:[%s1908_s9] sm:$0xff] }
  0xb4   : > { %787 = vmatpush.bf16.msrb.mxu0 %v1421_v44 }
  0xbc   : > { %1321 = vmatmul.msk.bf16.gmra.mxu1 %vm475_vm0, %v526_v31 }
  0xcc   : > { %1322 = vmatmul.msk.bf16.gmra.mxu1 %vm475_vm0, %v527_v39 }
  0xdc   : > { %1323 = vmatmul.msk.bf16.gmra.mxu1 %vm475_vm0, %v528_v45 }
 0x129   : > { %v570_v47 = vpop.f32.mrf.mxu1 }
 0x12a   : > { %v571_v49 = vadd.f32 %v1501_v48, %v570_v47 }
 0x12c   : > { %v590_v52 = vmax.f32 %v571_v49, 0.0 }
 0x131   : > { %v572_v50 = vpop.f32.mrf.mxu1 }
 0x132   : > { %v573_v51 = vadd.f32 %v1501_v48, %v572_v50 }
 0x134   : > { %v591_v53 = vmax.f32 %v573_v51, 0.0 }
 0x136   : > { %v598_v54 = vpack.c.bf16 %v591_v53, %v590_v52 }
 0x138   : > { %1332 = vmatmul.msk.bf16.vlgmr.msrb.gmra.mxu2 %vm475_vm0, %v598_v54 }
 0x139   : > { %v575_v55 = vpop.f32.mrf.mxu1 }
 0x13a   : > { %v576_v56 = vadd.f32 %v1501_v48, %v575_v55 }
 0x13c   : > { %v592_v59 = vmax.f32 %v576_v56, 0.0 }
 0x141   : > { %v577_v57 = vpop.f32.mrf.mxu1 }
 0x142   : > { %v578_v58 = vadd.f32 %v1501_v48, %v577_v57 }
 0x144   : > { %v593_v60 = vmax.f32 %v578_v58, 0.0 }
 0x146   : > { %v599_v61 = vpack.c.bf16 %v593_v60, %v592_v59  ;;  %v1424_v60 = vld [vmem:[%s1920_s1 + $0x8] sm:$0xff] }
 0x147   : > { %932 = vmatpush.bf16.msra.mxu1 %v1424_v60 }
 0x148   : > { %1333 = vmatmul.msk.bf16.gmra.mxu2 %vm475_vm0, %v599_v61 }
 0x149   : > { %v580_v63 = vpop.f32.mrf.mxu1 }
 0x14a   : > { %v581_v0 = vadd.f32 %v1501_v48, %v580_v63 }
 0x14b   : > { %933 = vmatpush.bf16.msra.mxu1 %v1423_v62 }
 0x14c   : > { %v594_v3 = vmax.f32 %v581_v0, 0.0 }
 0x151   : > { %v582_v1 = vpop.f32.mrf.mxu1 }
 0x152   : > { %v583_v2 = vadd.f32 %v1501_v48, %v582_v1 }
 0x154   : > { %v595_v4 = vmax.f32 %v583_v2, 0.0 }
 0x156   : > { %v600_v5 = vpack.c.bf16 %v595_v4, %v594_v3 }
 0x158   : > { %1334 = vmatmul.msk.bf16.gmra.mxu2 %vm475_vm0, %v600_v5 }
 0x159   : > { %v585_v6 = vpop.f32.mrf.mxu1 }
 0x15a   : > { %v586_v7 = vadd.f32 %v1501_v48, %v585_v6 }
 0x15c   : > { %v596_v10 = vmax.f32 %v586_v7, 0.0 }
 0x161   : > { %v587_v8 = vpop.f32.mrf.mxu1 }
 0x162   : > { %v588_v9 = vadd.f32 %v1501_v48, %v587_v8 }
 0x164   : > { %v597_v11 = vmax.f32 %v588_v9, 0.0 }
 0x166   : > { %v601_v12 = vpack.c.bf16 %v597_v11, %v596_v10 }
 0x168   : > { %1335 = vmatmul.msk.bf16.gmra.mxu2 %vm475_vm0, %v601_v12  ;;  %v1504_v12 = vld [vmem:[%s1909_s10] ss:$0 sm:$0xff] }
 0x1bb   : > { %v643_v14 = vpop.f32.mrf.mxu2 }
 0x1bc   : > { %v644_v16 = vadd.f32 %v1502_v15, %v643_v14 }
 0x1be   : > { %v663_v19 = vmax.f32 %v644_v16, 0.0 }
 0x1c3   : > { %v645_v17 = vpop.f32.mrf.mxu2 }
 0x1c4   : > { %v646_v18 = vadd.f32 %v1502_v15, %v645_v17 }
 0x1c6   : > { %v664_v20 = vmax.f32 %v646_v18, 0.0 }
 0x1c8   : > { %v671_v21 = vpack.c.bf16 %v664_v20, %v663_v19 }
 0x1ca   : > { %1344 = vmatmul.msk.bf16.vlgmr.msrb.gmra.mxu3 %vm475_vm0, %v671_v21 }
 0x1cb   : > { %v648_v22 = vpop.f32.mrf.mxu2 }
 0x1cc   : > { %v649_v23 = vadd.f32 %v1502_v15, %v648_v22 }
 0x1ce   : > { %v665_v26 = vmax.f32 %v649_v23, 0.0 }
 0x1d3   : > { %v650_v24 = vpop.f32.mrf.mxu2 }
 0x1d4   : > { %v651_v25 = vadd.f32 %v1502_v15, %v650_v24 }
 0x1d6   : > { %v666_v27 = vmax.f32 %v651_v25, 0.0 }
 0x1d8   : > { %v672_v28 = vpack.c.bf16 %v666_v27, %v665_v26 }
 0x1da   : > { %1345 = vmatmul.msk.bf16.gmra.mxu3 %vm475_vm0, %v672_v28 }
 0x1db   : > { %v653_v30 = vpop.f32.mrf.mxu2 }
 0x1dc   : > { %v654_v31 = vadd.f32 %v1502_v15, %v653_v30 }
 0x1de   : > { %v667_v34 = vmax.f32 %v654_v31, 0.0 }
 0x1e3   : > { %v655_v32 = vpop.f32.mrf.mxu2 }
 0x1e4   : > { %v656_v33 = vadd.f32 %v1502_v15, %v655_v32 }
 0x1e6   : > { %v668_v35 = vmax.f32 %v656_v33, 0.0 }
 0x1e8   : > { %v673_v36 = vpack.c.bf16 %v668_v35, %v667_v34 }
 0x1ea   : > { %1346 = vmatmul.msk.bf16.gmra.mxu3 %vm475_vm0, %v673_v36 }
 0x1eb   : > { %v658_v37 = vpop.f32.mrf.mxu2 }
 0x1ec   : > { %v659_v38 = vadd.f32 %v1502_v15, %v658_v37 }
 0x1ee   : > { %v669_v41 = vmax.f32 %v659_v38, 0.0 }
 0x1f3   : > { %v660_v39 = vpop.f32.mrf.mxu2 }
 0x1f4   : > { %v661_v40 = vadd.f32 %v1502_v15, %v660_v39  ;;  %v1426_v39 = vld [vmem:[%s1902_s3 + $0x8] sm:$0xff] }
 0x1f5   : > { %1005 = vmatpush.bf16.msra.mxu2 %v1426_v39 }
 0x1f6   : > { %v670_v42 = vmax.f32 %v661_v40, 0.0  ;;  %v1425_v40 = vld [vmem:[%s1902_s3] sm:$0xff] }
 0x1f8   : > { %v674_v43 = vpack.c.bf16 %v670_v42, %v669_v41 }
 0x1f9   : > { %1006 = vmatpush.bf16.msra.mxu2 %v1425_v40 }
 0x1fa   : > { %1347 = vmatmul.msk.bf16.gmra.mxu3 %vm475_vm0, %v674_v43 }
 0x24d   : > { %v716_v45 = vpop.f32.mrf.mxu3 }
 0x24e   : > { %v717_v47 = vadd.f32 %v1503_v46, %v716_v45 }
 0x250   : > { %v736_v50 = vmax.f32 %v717_v47, 0.0 }
 0x255   : > { %v718_v48 = vpop.f32.mrf.mxu3 }
 0x256   : > { %v719_v49 = vadd.f32 %v1503_v46, %v718_v48 }
 0x258   : > { %v737_v51 = vmax.f32 %v719_v49, 0.0 }
 0x25a   : > { %v744_v52 = vpack.c.bf16 %v737_v51, %v736_v50 }
 0x25c   : > { %1356 = vmatmul.msk.bf16.vlgmr.msrb.gmra.mxu0 %vm475_vm0, %v744_v52 }
 0x25d   : > { %v721_v53 = vpop.f32.mrf.mxu3 }
 0x25e   : > { %v722_v54 = vadd.f32 %v1503_v46, %v721_v53 }
 0x260   : > { %v738_v57 = vmax.f32 %v722_v54, 0.0 }
 0x265   : > { %v723_v55 = vpop.f32.mrf.mxu3 }
 0x266   : > { %v724_v56 = vadd.f32 %v1503_v46, %v723_v55 }
 0x268   : > { %v739_v58 = vmax.f32 %v724_v56, 0.0 }
 0x26a   : > { %v745_v59 = vpack.c.bf16 %v739_v58, %v738_v57 }
 0x26c   : > { %1357 = vmatmul.msk.bf16.gmra.mxu0 %vm475_vm0, %v745_v59 }
 0x26d   : > { %v726_v61 = vpop.f32.mrf.mxu3 }
 0x26e   : > { %v727_v63 = vadd.f32 %v1503_v46, %v726_v61 }
 0x270   : > { %v740_v2 = vmax.f32 %v727_v63, 0.0 }
 0x275   : > { %v728_v0 = vpop.f32.mrf.mxu3 }
 0x276   : > { %v729_v1 = vadd.f32 %v1503_v46, %v728_v0 }
 0x278   : > { %v741_v3 = vmax.f32 %v729_v1, 0.0 }
 0x27a   : > { %v746_v4 = vpack.c.bf16 %v741_v3, %v740_v2  ;;  %v1505_v3 = vld [vmem:[%s1922_s2] ss:$0 sm:$0xff] }
 0x27c   : > { %1358 = vmatmul.msk.bf16.gmra.mxu0 %vm475_vm0, %v746_v4 }
 0x27d   : > { %v731_v5 = vpop.f32.mrf.mxu3 }
 0x27e   : > { %v732_v6 = vadd.f32 %v1503_v46, %v731_v5 }
 0x280   : > { %v742_v9 = vmax.f32 %v732_v6, 0.0 }
 0x285   : > { %v733_v7 = vpop.f32.mrf.mxu3 }
 0x286   : > { %v734_v8 = vadd.f32 %v1503_v46, %v733_v7 }
 0x288   : > { %v743_v10 = vmax.f32 %v734_v8, 0.0 }
 0x28a   : > { %v747_v11 = vpack.c.bf16 %v743_v10, %v742_v9 }
 0x28c   : > { %1359 = vmatmul.msk.bf16.gmra.mxu0 %vm475_vm0, %v747_v11 }
 0x2d9   : > { %v789_v13 = vpop.f32.mrf.mxu0 }
 0x2da   : > { %v790_v14 = vadd.f32 %v1504_v12, %v789_v13 }
 0x2dc   : > { %v809_v15 = vmax.f32 %v790_v14, 0.0 }
 0x2de   : > { %v817_v18 = vpack.c.bf16 %v809_v15, %v809_v15 }
 0x2e0   : > { %v890_v21 = vunpack.c.l.b16 %v817_v18 }
 0x2e1   : > { %v791_v16 = vpop.f32.mrf.mxu0 }
 0x2e2   : > { %v792_v17 = vadd.f32 %v1504_v12, %v791_v16 }
 0x2e4   : > { %v810_v19 = vmax.f32 %v792_v17, 0.0 }
 0x2e6   : > { %v818_v20 = vpack.c.bf16 %v810_v19, %v810_v19  ;;  %v1480_v25 = vpack.i.bf16 %v810_v19, %v809_v15 }
 0x2e8   : > { %v891_v22 = vunpack.c.l.b16 %v818_v20  ;;  %1481 = vrot.lane.b32.xlu0 %v1480_v25, %s1573_s23  ;;  %v1427_v25 = vld [vmem:[%s1904_s5] sm:$0xff] }
 0x2e9   : > { %v794_v23 = vpop.f32.mrf.mxu0 }
 0x2ea   : > { %v898_v24 = vpack.c.b16 %v891_v22, %v890_v21  ;;  %v795_v26 = vadd.f32 %v1504_v12, %v794_v23  ;;  %v1428_v23 = vld [vmem:[%s1904_s5 + $0x8] sm:$0xff] }
 0x2eb   : > { %1078 = vmatpush.bf16.msra.mxu3 %v1428_v23 }
 0x2ec   : > { %1368 = vmatmul.msk.bf16.vlgmr.msra.gmra.mxu1 %vm475_vm0, %v898_v24  ;;  %v811_v27 = vmax.f32 %v795_v26, 0.0 }
 0x2ee   : > { %v819_v30 = vpack.c.bf16 %v811_v27, %v811_v27 }
 0x2ef   : > { %1079 = vmatpush.bf16.msra.mxu3 %v1427_v25 }
 0x2f0   : > { %v892_v33 = vunpack.c.l.b16 %v819_v30 }
 0x2f1   : > { %v796_v28 = vpop.f32.mrf.mxu0 }
 0x2f2   : > { %v797_v29 = vadd.f32 %v1504_v12, %v796_v28 }
 0x2f4   : > { %v812_v31 = vmax.f32 %v797_v29, 0.0 }
 0x2f6   : > { %v820_v32 = vpack.c.bf16 %v812_v31, %v812_v31  ;;  %v1485_v37 = vpack.i.bf16 %v812_v31, %v811_v27 }
 0x2f8   : > { %v893_v34 = vunpack.c.l.b16 %v820_v32  ;;  %1486 = vrot.lane.b32.xlu0 %v1485_v37, %s1573_s23 }
 0x2f9   : > { %v799_v35 = vpop.f32.mrf.mxu0 }
 0x2fa   : > { %v899_v36 = vpack.c.b16 %v893_v34, %v892_v33  ;;  %v800_v38 = vadd.f32 %v1504_v12, %v799_v35 }
 0x2fc   : > { %1369 = vmatmul.msk.bf16.gmra.mxu1 %vm475_vm0, %v899_v36  ;;  %v813_v41 = vmax.f32 %v800_v38, 0.0 }
 0x2fe   : > { %v821_v44 = vpack.c.bf16 %v813_v41, %v813_v41 }
 0x300   : > { %v894_v47 = vunpack.c.l.b16 %v821_v44 }
 0x301   : > { %v801_v42 = vpop.f32.mrf.mxu0 }
 0x302   : > { %v802_v43 = vadd.f32 %v1504_v12, %v801_v42 }
 0x304   : > { %v814_v45 = vmax.f32 %v802_v43, 0.0  ;;  %v1506_v43 = vld [vmem:[%s1903_s4] ss:$0 sm:$0xff] }
 0x306   : > { %v822_v46 = vpack.c.bf16 %v814_v45, %v814_v45  ;;  %v1490_v50 = vpack.i.bf16 %v814_v45, %v813_v41 }
 0x308   : > { %v895_v48 = vunpack.c.l.b16 %v822_v46  ;;  %1491 = vrot.lane.b32.xlu1 %v1490_v50, %s1573_s23 }
 0x309   : > { %v804_v49 = vpop.f32.mrf.mxu0 }
 0x30a   : > { %v900_v51 = vpack.c.b16 %v895_v48, %v894_v47  ;;  %v805_v52 = vadd.f32 %v1504_v12, %v804_v49 }
 0x30c   : > { %1370 = vmatmul.msk.bf16.gmra.mxu1 %vm475_vm0, %v900_v51  ;;  %v815_v53 = vmax.f32 %v805_v52, 0.0 }
 0x30e   : > { %v823_v56 = vpack.c.bf16 %v815_v53, %v815_v53 }
 0x310   : > { %v896_v59 = vunpack.c.l.b16 %v823_v56 }
 0x311   : > { %v806_v54 = vpop.f32.mrf.mxu0 }
 0x312   : > { %v807_v55 = vadd.f32 %v1504_v12, %v806_v54 }
 0x314   : > { %v816_v57 = vmax.f32 %v807_v55, 0.0 }
 0x316   : > { %v824_v58 = vpack.c.bf16 %v816_v57, %v816_v57  ;;  %v1495_v61 = vpack.i.bf16 %v816_v57, %v815_v53  ;;  %v1430_v57 = vld [vmem:[%s1910_s11 + $0x8] sm:$0xff] }
 0x317   : > { %1151 = vmatpush.bf16.msra.mxu0 %v1430_v57 }
 0x318   : > { %v897_v60 = vunpack.c.l.b16 %v824_v58  ;;  %1496 = vrot.lane.b32.xlu1 %v1495_v61, %s1573_s23  ;;  %s1230_s23 = sshll.u32 %s1227_s20, 4  ;;  %s1231_s23 = int_to_ptr.hbm [resolvable:$true] %s1230_s23 }
 0x319   : > { %s1523_s0 = sshra.s32 %s1231_s23, 4  ;;  %s1524_s0 = int_to_ptr.hbm [resolvable:$true] %s1523_s0 }
 0x31a   : > { %v901_v62 = vpack.c.b16 %v897_v60, %v896_v59  ;;  %v1429_v59 = vld [vmem:[%s1910_s11] sm:$0xff]  ;;  %s1525_s1 = scalar_lea.hbm %s1524_s0, 64  ;;  %p1530_p0 = scmp.lt.s32.totalorder %s1524_s0, %s1912_s13 }
 0x31b   : > { %1152 = vmatpush.bf16.msra.mxu0 %v1429_v59  ;;  %p1526_p11 = scmp.ne.s32.totalorder %s1524_s0, %s1525_s1  ;;  %p1531_p1 = scmp.lt.s32.totalorder %s1529_s30, %s1525_s1 }
 0x31c   : > { %1371 = vmatmul.msk.bf16.gmra.mxu1 %vm475_vm0, %v901_v62 }
 0x31d   : > { %p1527_p12 = pnand %p1526_p11, %p1684_p5  ;;  %p1532_p2 = por %p1531_p1, %p1530_p0 }
 0x31f   : > { %p1528_p13 = pneg %p1527_p12 }
 0x321   : > { %p1533_p3 = pnand %p1532_p2, %p1528_p13 }
 0x35a   : > { %v1482_v63 = vpop.permute.xlu0 %1481 }
 0x35b   : > { %v1484_v0 = vunpack.i.h.bf16 %v1482_v63  ;;  %v1483_v1 = vunpack.i.l.bf16 %v1482_v63 }
 0x35d   : > { %866 = vst.msk [vmem:[%s1786_s21] sm:$0xff] %vm865_vm1, %v1483_v1 }
 0x35e   : > { %867 = vst.msk [vmem:[%s1786_s21 + $0x8] sm:$0xff] %vm865_vm1, %v1484_v0 }
 0x369   : > { %v935_v2 = vpop.f32.mrf.mxu1 }
 0x36a   : > { %v1487_v4 = vpop.permute.xlu0 %1486  ;;  %v936_v7 = vadd.f32 %v1505_v3, %v935_v2 }
 0x36b   : > { %v1489_v5 = vunpack.i.h.bf16 %v1487_v4  ;;  %v1488_v6 = vunpack.i.l.bf16 %v1487_v4 }
 0x36c   : > { %v955_v10 = vmax.f32 %v936_v7, 0.0 }
 0x36d   : > { %868 = vst.msk [vmem:[%s1786_s21 + $0x10] sm:$0xff] %vm865_vm1, %v1488_v6 }
 0x36e   : > { %869 = vst.msk [vmem:[%s1786_s21 + $0x18] sm:$0xff] %vm865_vm1, %v1489_v5 }
 0x371   : > { %v937_v8 = vpop.f32.mrf.mxu1 }
 0x372   : > { %v938_v9 = vadd.f32 %v1505_v3, %v937_v8 }
 0x374   : > { %v956_v11 = vmax.f32 %v938_v9, 0.0 }
 0x376   : > { %v963_v12 = vpack.c.bf16 %v956_v11, %v955_v10  ;;  %v1507_v10 = vld [vmem:[%s1905_s6] ss:$0 sm:$0xff] }
 0x378   : > { %1380 = vmatmul.msk.bf16.vlgmr.msra.gmra.mxu2 %vm475_vm0, %v963_v12 }
 0x379   : > { %v940_v13 = vpop.f32.mrf.mxu1 }
 0x37a   : > { %v1492_v14 = vpop.permute.xlu1 %1491  ;;  %v941_v17 = vadd.f32 %v1505_v3, %v940_v13 }
 0x37b   : > { %v1494_v15 = vunpack.i.h.bf16 %v1492_v14  ;;  %v1493_v16 = vunpack.i.l.bf16 %v1492_v14 }
 0x37c   : > { %v957_v20 = vmax.f32 %v941_v17, 0.0 }
 0x37d   : > { %870 = vst.msk [vmem:[%s1786_s21 + $0x20] sm:$0xff] %vm865_vm1, %v1493_v16 }
 0x37e   : > { %871 = vst.msk [vmem:[%s1786_s21 + $0x28] sm:$0xff] %vm865_vm1, %v1494_v15 }
 0x381   : > { %v942_v18 = vpop.f32.mrf.mxu1 }
 0x382   : > { %v943_v19 = vadd.f32 %v1505_v3, %v942_v18 }
 0x384   : > { %v958_v21 = vmax.f32 %v943_v19, 0.0 }
 0x386   : > { %v964_v22 = vpack.c.bf16 %v958_v21, %v957_v20 }
 0x388   : > { %1381 = vmatmul.msk.bf16.gmra.mxu2 %vm475_vm0, %v964_v22 }
 0x389   : > { %v945_v24 = vpop.f32.mrf.mxu1 }
 0x38a   : > { %v1497_v26 = vpop.permute.xlu1 %1496  ;;  %v946_v29 = vadd.f32 %v1505_v3, %v945_v24 }
 0x38b   : > { %v1499_v27 = vunpack.i.h.bf16 %v1497_v26  ;;  %v1498_v28 = vunpack.i.l.bf16 %v1497_v26 }
 0x38c   : > { %v959_v32 = vmax.f32 %v946_v29, 0.0 }
 0x38d   : > { %872 = vst.msk [vmem:[%s1786_s21 + $0x30] sm:$0xff] %vm865_vm1, %v1498_v28 }
 0x38e   : > { %873 = vst.msk [vmem:[%s1786_s21 + $0x38] sm:$0xff] %vm865_vm1, %v1499_v27 }
 0x391   : > { %v947_v30 = vpop.f32.mrf.mxu1 }
 0x392   : > { %v948_v31 = vadd.f32 %v1505_v3, %v947_v30 }
 0x394   : > { %v960_v33 = vmax.f32 %v948_v31, 0.0 }
 0x396   : > { %v965_v34 = vpack.c.bf16 %v960_v33, %v959_v32 }
 0x398   : > { %1382 = vmatmul.msk.bf16.gmra.mxu2 %vm475_vm0, %v965_v34 }
 0x399   : > { %v950_v35 = vpop.f32.mrf.mxu1 }
 0x39a   : > { %v951_v36 = vadd.f32 %v1505_v3, %v950_v35 }
 0x39c   : > { %v961_v39 = vmax.f32 %v951_v36, 0.0 }
 0x3a1   : > { %v952_v37 = vpop.f32.mrf.mxu1 }
 0x3a2   : > { %v953_v38 = vadd.f32 %v1505_v3, %v952_v37 }
 0x3a4   : > { %v962_v40 = vmax.f32 %v953_v38, 0.0  ;;  %v1508_v38 = vld [vmem:[%s1911_s12] ss:$0 sm:$0xff] }
 0x3a6   : > { %v966_v41 = vpack.c.bf16 %v962_v40, %v961_v39 }
 0x3a8   : > { %1383 = vmatmul.msk.bf16.gmra.mxu2 %vm475_vm0, %v966_v41 }
 0x3fb   : > { %v1008_v42 = vpop.f32.mrf.mxu2 }
 0x3fc   : > { %v1009_v44 = vadd.f32 %v1506_v43, %v1008_v42 }
 0x3fe   : > { %v1028_v47 = vmax.f32 %v1009_v44, 0.0 }
 0x403   : > { %v1010_v45 = vpop.f32.mrf.mxu2 }
 0x404   : > { %v1011_v46 = vadd.f32 %v1506_v43, %v1010_v45 }
 0x406   : > { %v1029_v48 = vmax.f32 %v1011_v46, 0.0 }
 0x408   : > { %v1036_v49 = vpack.c.bf16 %v1029_v48, %v1028_v47 }
 0x40a   : > { %1392 = vmatmul.msk.bf16.vlgmr.msra.gmra.mxu3 %vm475_vm0, %v1036_v49 }
 0x40b   : > { %v1013_v50 = vpop.f32.mrf.mxu2 }
 0x40c   : > { %v1014_v51 = vadd.f32 %v1506_v43, %v1013_v50 }
 0x40e   : > { %v1030_v54 = vmax.f32 %v1014_v51, 0.0 }
 0x413   : > { %v1015_v52 = vpop.f32.mrf.mxu2 }
 0x414   : > { %v1016_v53 = vadd.f32 %v1506_v43, %v1015_v52 }
 0x416   : > { %v1031_v55 = vmax.f32 %v1016_v53, 0.0 }
 0x418   : > { %v1037_v56 = vpack.c.bf16 %v1031_v55, %v1030_v54 }
 0x41a   : > { %1393 = vmatmul.msk.bf16.gmra.mxu3 %vm475_vm0, %v1037_v56 }
 0x41b   : > { %v1018_v58 = vpop.f32.mrf.mxu2 }
 0x41c   : > { %v1019_v60 = vadd.f32 %v1506_v43, %v1018_v58 }
 0x41e   : > { %v1032_v63 = vmax.f32 %v1019_v60, 0.0 }
 0x423   : > { %v1020_v61 = vpop.f32.mrf.mxu2 }
 0x424   : > { %v1021_v62 = vadd.f32 %v1506_v43, %v1020_v61 }
 0x426   : > { %v1033_v0 = vmax.f32 %v1021_v62, 0.0 }
 0x428   : > { %v1038_v1 = vpack.c.bf16 %v1033_v0, %v1032_v63 }
 0x42a   : > { %1394 = vmatmul.msk.bf16.gmra.mxu3 %vm475_vm0, %v1038_v1 }
 0x42b   : > { %v1023_v2 = vpop.f32.mrf.mxu2 }
 0x42c   : > { %v1024_v3 = vadd.f32 %v1506_v43, %v1023_v2 }
 0x42e   : > { %v1034_v6 = vmax.f32 %v1024_v3, 0.0 }
 0x433   : > { %v1025_v4 = vpop.f32.mrf.mxu2 }
 0x434   : > { %v1026_v5 = vadd.f32 %v1506_v43, %v1025_v4 }
 0x436   : > { %v1035_v7 = vmax.f32 %v1026_v5, 0.0 }
 0x438   : > { %v1039_v8 = vpack.c.bf16 %v1035_v7, %v1034_v6 }
 0x43a   : > { %1395 = vmatmul.msk.bf16.gmra.mxu3 %vm475_vm0, %v1039_v8 }
 0x48d   : > { %v1081_v9 = vpop.f32.mrf.mxu3 }
 0x48e   : > { %v1082_v11 = vadd.f32 %v1507_v10, %v1081_v9 }
 0x490   : > { %v1101_v14 = vmax.f32 %v1082_v11, 0.0 }
 0x495   : > { %v1083_v12 = vpop.f32.mrf.mxu3 }
 0x496   : > { %v1084_v13 = vadd.f32 %v1507_v10, %v1083_v12 }
 0x498   : > { %v1102_v15 = vmax.f32 %v1084_v13, 0.0 }
 0x49a   : > { %v1109_v16 = vpack.c.bf16 %v1102_v15, %v1101_v14 }
 0x49c   : > { %1404 = vmatmul.msk.bf16.vlgmr.msra.gmra.mxu0 %vm475_vm0, %v1109_v16 }
 0x49d   : > { %v1086_v17 = vpop.f32.mrf.mxu3 }
 0x49e   : > { %v1087_v18 = vadd.f32 %v1507_v10, %v1086_v17 }
 0x4a0   : > { %v1103_v21 = vmax.f32 %v1087_v18, 0.0 }
 0x4a5   : > { %v1088_v19 = vpop.f32.mrf.mxu3 }
 0x4a6   : > { %v1089_v20 = vadd.f32 %v1507_v10, %v1088_v19 }
 0x4a8   : > { %v1104_v22 = vmax.f32 %v1089_v20, 0.0 }
 0x4aa   : > { %v1110_v23 = vpack.c.bf16 %v1104_v22, %v1103_v21 }
 0x4ac   : > { %1405 = vmatmul.msk.bf16.gmra.mxu0 %vm475_vm0, %v1110_v23 }
 0x4ad   : > { %v1091_v24 = vpop.f32.mrf.mxu3 }
 0x4ae   : > { %v1092_v25 = vadd.f32 %v1507_v10, %v1091_v24 }
 0x4b0   : > { %v1105_v28 = vmax.f32 %v1092_v25, 0.0 }
 0x4b5   : > { %v1093_v26 = vpop.f32.mrf.mxu3 }
 0x4b6   : > { %v1094_v27 = vadd.f32 %v1507_v10, %v1093_v26 }
 0x4b8   : > { %v1106_v29 = vmax.f32 %v1094_v27, 0.0 }
 0x4ba   : > { %v1111_v30 = vpack.c.bf16 %v1106_v29, %v1105_v28 }
 0x4bc   : > { %1406 = vmatmul.msk.bf16.gmra.mxu0 %vm475_vm0, %v1111_v30 }
 0x4bd   : > { %v1096_v31 = vpop.f32.mrf.mxu3 }
 0x4be   : > { %v1097_v32 = vadd.f32 %v1507_v10, %v1096_v31 }
 0x4c0   : > { %v1107_v35 = vmax.f32 %v1097_v32, 0.0 }
 0x4c5   : > { %v1098_v33 = vpop.f32.mrf.mxu3 }
 0x4c6   : > { %v1099_v34 = vadd.f32 %v1507_v10, %v1098_v33 }
 0x4c8   : > { %v1108_v36 = vmax.f32 %v1099_v34, 0.0 }
 0x4ca   : > { %v1112_v37 = vpack.c.bf16 %v1108_v36, %v1107_v35 }
 0x4cc   : > { %1407 = vmatmul.msk.bf16.gmra.mxu0 %vm475_vm0, %v1112_v37 }
 0x519   : > { %v1154_v39 = vpop.f32.mrf.mxu0 }
 0x51a   : > { %v1155_v40 = vadd.f32 %v1508_v38, %v1154_v39 }
 0x51c   : > { %1182 = vrot.lane.b32.xlu2 %v1155_v40, %s1913_s24 }
 0x521   : > { %v1156_v41 = vpop.f32.mrf.mxu0 }
 0x522   : > { %v1157_v42 = vadd.f32 %v1508_v38, %v1156_v41 }
 0x524   : > { %1184 = vrot.lane.b32.xlu2 %v1157_v42, %s1913_s24 }
 0x529   : > { %v1159_v43 = vpop.f32.mrf.mxu0 }
 0x52a   : > { %v1160_v44 = vadd.f32 %v1508_v38, %v1159_v43 }
 0x52c   : > { %1186 = vrot.lane.b32.xlu0 %v1160_v44, %s1913_s24 }
 0x531   : > { %v1161_v45 = vpop.f32.mrf.mxu0 }
 0x532   : > { %v1162_v46 = vadd.f32 %v1508_v38, %v1161_v45 }
 0x534   : > { %1188 = vrot.lane.b32.xlu1 %v1162_v46, %s1913_s24 }
 0x539   : > { %v1164_v47 = vpop.f32.mrf.mxu0 }
 0x53a   : > { %v1165_v48 = vadd.f32 %v1508_v38, %v1164_v47 }
 0x53c   : > { %1190 = vrot.lane.b32.xlu2 %v1165_v48, %s1913_s24 }
 0x541   : > { %v1166_v49 = vpop.f32.mrf.mxu0 }
 0x542   : > { %v1167_v50 = vadd.f32 %v1508_v38, %v1166_v49 }
 0x544   : > { %1192 = vrot.lane.b32.xlu0 %v1167_v50, %s1913_s24 }
 0x549   : > { %v1169_v51 = vpop.f32.mrf.mxu0 }
 0x54a   : > { %v1170_v52 = vadd.f32 %v1508_v38, %v1169_v51 }
 0x54c   : > { %1194 = vrot.lane.b32.xlu1 %v1170_v52, %s1913_s24 }
 0x551   : > { %v1171_v53 = vpop.f32.mrf.mxu0 }
 0x552   : > { %v1172_v54 = vadd.f32 %v1508_v38, %v1171_v53 }
 0x554   : > { %1196 = vrot.lane.b32.xlu2 %v1172_v54, %s1913_s24  ;;  %s1216_s24 = scalar_lea.sflag [#allocation3], %s432_s16 }
 0x576   : > { %v1183_v55 = vpop.permute.xlu2 %1182 }
 0x577   : > { %1207 = vst.msk [vmem:[%s1786_s21] sm:$0xff] %vm1206_vm2, %v1183_v55 }
 0x57e   : > { %v1185_v56 = vpop.permute.xlu2 %1184 }
 0x57f   : > { %1208 = vst.msk [vmem:[%s1786_s21 + $0x8] sm:$0xff] %vm1206_vm2, %v1185_v56 }
 0x596   : > { %v1191_v57 = vpop.permute.xlu2 %1190 }
 0x597   : > { %1211 = vst.msk [vmem:[%s1786_s21 + $0x20] sm:$0xff] %vm1206_vm2, %v1191_v57 }
 0x59e   : > { %v1187_v58 = vpop.permute.xlu0 %1186 }
 0x59f   : > { %1209 = vst.msk [vmem:[%s1786_s21 + $0x10] sm:$0xff] %vm1206_vm2, %v1187_v58 }
 0x5a6   : > { %v1189_v59 = vpop.permute.xlu1 %1188 }
 0x5a7   : > { %1210 = vst.msk [vmem:[%s1786_s21 + $0x18] sm:$0xff] %vm1206_vm2, %v1189_v59 }
 0x5ae   : > { %v1197_v60 = vpop.permute.xlu2 %1196 }
 0x5af   : > { %1214 = vst.msk [vmem:[%s1786_s21 + $0x38] sm:$0xff] %vm1206_vm2, %v1197_v60 }
 0x5b6   : > { %v1193_v61 = vpop.permute.xlu0 %1192 }
 0x5b7   : > { %1212 = vst.msk [vmem:[%s1786_s21 + $0x28] sm:$0xff] %vm1206_vm2, %v1193_v61 }
 0x5be   : > { %v1195_v62 = vpop.permute.xlu1 %1194 }
 0x5bf   : > { %1213 = vst.msk [vmem:[%s1786_s21 + $0x30] sm:$0xff] %vm1206_vm2, %v1195_v62 }
 0x5c0   : > { %1536 = shalt.err (!%p1533_p3)
}
 0x5c1   : > { %s1575_s16 = smov 128   ;;  %s1923_s21 = smov 8  }
 0x5c2   : > { %1438 = dma.vmem_to_hbm [thread:$0]  (%p1684_p5), %s1229_s22, 1024, %s1231_s23, %s1216_s24, %s1575_s16, %s1575_s16, %s1923_s21  }
 0x5c3 PF: > { %p1444_p4 = scmp.ge.s32.totalorder %s1571_s28, 2  ;;  %s1245_s2 = sand.u32 1, %s1559_s25  }
 0x5c4   : > { %s1246_s20 = scalar_lea.sflag [#allocation3], %s1245_s2 }
 0x5c5   : > { %p1441_p7 = pnand %p1444_p4, %p1688_p6 }
 0x5c7   : > { %p1442_p8 = pneg %p1441_p7 }
 0x5c9   : > { %1554 = dma.done.wait (%p1442_p8), %s1246_s20, 1024  }
 0x5ca   : > { %1556 = vsyncadd (%p1442_p8), %s1246_s20, 4294966272  ;;  %s1924_s0 = sld [smem:[#allocation5_spill]]  ;;  %p23_p9 = scmp.ge.s32.totalorder %s1671_s14, 4  }
 0x5cb   : > { %s1925_s25 = smov %s1563_s26  ;;  %s1926_s26 = smov %s1567_s27 }
 0x5cc   : > { %s1928_s28 = smov %s1671_s14  ;;  %25 = sbr.rel (!%p23_p9) target bundleno = 7 (0x7), region = 107 }
 0x5d0   : > { %s1927_s27 = smov %s1924_s0 }
 0x5d1   :  { %1252 = vsyncpa [#allocation3], 1 }
 0x5d2   :  { %1254 = vsyncpa [#allocation3 + $0x1], 1 }

</bundles_post_ra>
